<compile_context>
chip_gen: v5e
topology: v5e:2x2
jax: 0.10.0
libtpu: 0.0.40
codegen_flags: <defaults>
</compile_context>

<pallas_src>
import jax
import jax.numpy as jnp
from jax.experimental import pallas as pl
from jax.experimental.pallas import tpu as pltpu


def _patch_embed_kernel(x_ref, w_ref, p_ref, o_ref):
    # x_ref: (Bt, C, tm)   w_ref: (C, D)   p_ref: (3, D) = [bias; gamma; beta]
    # o_ref: (Bt, tm, D)
    w = w_ref[...]                                    # native dtype -> native MXU path
    p = p_ref[...].astype(jnp.float32)
    bias, gamma, beta = p[0:1, :], p[1:2, :], p[2:3, :]   # (1, D) each

    n_img = x_ref.shape[0]                            # static (compile-time) small int
    for i in range(n_img):                            # static unroll over packed images
        x = x_ref[i]                                  # (C, tm), native dtype
        # 1x1 conv == per-pixel linear projection.  Contract the channel axis of the
        # NCHW tile directly (x^T @ w): no layout transpose of the activations needed.
        # TODO(synk): confirm via pl.lower_as_mlir that Mosaic keeps this transposed-LHS
        # contraction in-vreg (C is tiny) rather than a VMEM relayout per step.
        y = jax.lax.dot_general(
            x, w,
            dimension_numbers=(((0,), (0,)), ((), ())),   # (C,tm) x (C,D) -> (tm,D)
            preferred_element_type=jnp.float32,
        )
        y = y + bias                                   # conv bias (f32)

        # LayerNorm over embed_dim, single-pass stats in f32 (torch eps = 1e-5).
        mean = jnp.mean(y, axis=-1, keepdims=True)
        mean_sq = jnp.mean(y * y, axis=-1, keepdims=True)
        var = jnp.maximum(mean_sq - mean * mean, 0.0)
        scale = jax.lax.rsqrt(var + 1e-5)
        o_ref[i] = ((y - mean) * scale * gamma + beta).astype(o_ref.dtype)


def _round_up(v, m):
    return (v + m - 1) // m * m


def _pick_tm(T, tm_max, *, min_tiles=1):
    """Row tile: full extent if small, else a multiple of 128 (lane/layout rule).
    min_tiles > 1 caps the tile so the grid has at least that many T-steps."""
    if min_tiles > 1:
        tm_max = min(tm_max, max(128, (pl.cdiv(T, min_tiles) // 128) * 128))
    if T <= tm_max:
        return T
    return max(128, (tm_max // 128) * 128)


def _vmem_needed(Bt, C, tm, D, x_b, w_b, o_b):
    """Padded VMEM footprint: double-buffered tiles + weight + params + f32 LN set."""
    c_r = _round_up(C, 8)
    d_r = _round_up(D, 128)
    tm_l = _round_up(tm, 128)
    tm_s = _round_up(tm, 8)
    act = 2 * Bt * c_r * tm_l * x_b          # (Bt, C, tm) input tile, x2 buffers
    out = 2 * Bt * tm_s * d_r * o_b          # (Bt, tm, D) output tile, x2 buffers
    wgt = 2 * c_r * d_r * w_b                # weight (resident; counted conservatively)
    prm = 2 * 8 * d_r * 4                    # stacked bias/gamma/beta
    ln = 2 * Bt * tm_s * d_r * 4             # f32 LayerNorm intermediates (y + temp)
    return act + out + wgt + prm + ln


def _vmem_cap_bytes():
    """~75% of physical VMEM: 48 MiB on v7x (64 MiB), ~96 MiB on v5e/v6e (128 MiB)."""
    try:
        phys = pltpu.get_tpu_info().vmem_capacity_bytes
    except Exception:
        phys = 64 * 1024 * 1024              # conservative (v7x) fallback
    return max(32 * 1024 * 1024, int(phys) * 3 // 4)


def patch_embed(x_nchw, w, b, gamma, beta, *, tm=2048, out_dtype=None):
    """x_nchw: (B, C, H, W); w: (C, D) (= torch conv weight[:, :, 0, 0].T);
    b, gamma, beta: (D,).  Returns (B, H*W, D)."""
    B, C, H, W = x_nchw.shape
    Cw, D = w.shape
    assert Cw == C, (Cw, C)
    T = H * W
    if out_dtype is None:
        out_dtype = x_nchw.dtype              # pass out_dtype=jnp.bfloat16 to halve the
        # dominant HBM stream if the consumer tolerates it (biggest single lever).

    # Both MXU operands in the activation dtype (cast touches only C*D elements).
    w = w.astype(x_nchw.dtype)
    # Free reshape (contiguous last dims): no extra HBM traffic, no NCHW->NHWC pass.
    x3d = x_nchw.reshape(B, C, T)
    # Stack the three small per-D vectors into one constant input (one resident DMA).
    params = jnp.stack([b, gamma, beta]).astype(jnp.float32)   # (3, D)

    # --- blocking decision -------------------------------------------------------
    if T <= 512 and B > 1:
        # Small-T path: pack several images per step to amortize per-step overhead,
        # but keep >= 2 grid steps so both TensorCores (v7x megacore) get work.
        tm_eff = T
        Bt = max(1, min(B, tm // max(T, 1)))
        Bt = min(Bt, max(1, pl.cdiv(B, 2)))
    else:
        Bt = 1
        min_tiles = 2 if (B == 1 and T > 256) else 1
        tm_eff = _pick_tm(T, tm, min_tiles=min_tiles)

    # --- VMEM budget (generation-aware) ------------------------------------------
    x_b = jnp.dtype(x_nchw.dtype).itemsize
    w_b = jnp.dtype(w.dtype).itemsize
    o_b = jnp.dtype(out_dtype).itemsize
    cap = _vmem_cap_bytes()
    needed = _vmem_needed(Bt, C, tm_eff, D, x_b, w_b, o_b)
    while needed > cap:
        if Bt > 1:
            Bt = (Bt + 1) // 2
        elif tm_eff >= 256 and tm_eff % 128 == 0:
            tm_eff = max(128, ((tm_eff // 2) // 128) * 128)
        else:
            break
        needed = _vmem_needed(Bt, C, tm_eff, D, x_b, w_b, o_b)

    grid = (pl.cdiv(B, Bt), pl.cdiv(T, tm_eff))   # ragged tails: Pallas block masking
    vmem_limit = int(min(cap, max(needed + (4 << 20), 16 << 20)))

    out = pl.pallas_call(
        _patch_embed_kernel,
        out_shape=jax.ShapeDtypeStruct((B, T, D), out_dtype),
        grid_spec=pltpu.PrefetchScalarGridSpec(
            num_scalar_prefetch=0,
            grid=grid,
            in_specs=[
                # Activations read directly in NCHW layout: (Bt, C, tm) slab.
                pl.BlockSpec((Bt, C, tm_eff), lambda bb, tt: (bb, 0, tt)),
                # Full (tiny) weight, resident across the grid.
                pl.BlockSpec((C, D), lambda bb, tt: (0, 0)),
                # Stacked bias / gamma / beta.
                pl.BlockSpec((3, D), lambda bb, tt: (0, 0)),
            ],
            # Lane axis of the output is the full embed_dim D (lane-dense when D is a
            # multiple of 128, as in the real model's D=768).
            out_specs=pl.BlockSpec((Bt, tm_eff, D), lambda bb, tt: (bb, tt, 0)),
        ),
        compiler_params=pltpu.CompilerParams(
            dimension_semantics=("parallel", "parallel"),
            vmem_limit_bytes=vmem_limit,
        ),
    )(x3d, w, params)

    return out


def patch_embed_ref(x_nchw, w, b, gamma, beta):
    """Pure-JAX reference mirroring the PyTorch forward."""
    B, C, H, W = x_nchw.shape
    D = w.shape[1]
    y = jnp.einsum("bchw,cd->bhwd", x_nchw.astype(jnp.float32), w.astype(jnp.float32)) + b
    y = y.reshape(B, H * W, D)
    mean = jnp.mean(y, axis=-1, keepdims=True)
    var = jnp.mean((y - mean) ** 2, axis=-1, keepdims=True)
    y = (y - mean) * jax.lax.rsqrt(var + 1e-5)
    return (y * gamma + beta).astype(x_nchw.dtype)


if __name__ == "__main__":
    key = jax.random.PRNGKey(0)
    k_x, k_w, k_b = jax.random.split(key, 3)

    B, C, H, W = 2, 4, 16, 16
    D = 32  # embed_dim (real model default is 768; demo kept small)

    x = jax.random.normal(k_x, (B, C, H, W), dtype=jnp.float32)
    # torch Conv2d(in_chans, embed_dim, 1) weight is (D, C, 1, 1); stored here as (C, D).
    w = jax.random.normal(k_w, (C, D), dtype=jnp.float32) * 0.1
    b = jax.random.normal(k_b, (D,), dtype=jnp.float32) * 0.1
    # LayerNorm default init: weight=1, bias=0
    gamma = jnp.ones((D,), dtype=jnp.float32)
    beta = jnp.zeros((D,), dtype=jnp.float32)

    out = patch_embed(x, w, b, gamma, beta)
    out = jax.block_until_ready(out)

    ref = patch_embed_ref(x, w, b, gamma, beta)
    assert out.shape == (B, H * W, D), out.shape
    # Tolerance accounts for TPU default matmul precision in both kernel and ref.
    assert jnp.allclose(out, ref, atol=1e-4, rtol=1e-4), float(jnp.max(jnp.abs(out - ref)))

    print("KERNEL_OK")
</pallas_src>

<mosaic_0001>
module attributes {stable_mosaic.version = 11 : i64} {
  func.func @_patch_embed_kernel(%arg0: i32, %arg1: i32, %arg2: memref<1x4x256xf32, #tpu.memory_space<vmem>>, %arg3: memref<4x32xf32, #tpu.memory_space<vmem>>, %arg4: memref<3x32xf32, #tpu.memory_space<vmem>>, %arg5: memref<1x256x32xf32, #tpu.memory_space<vmem>>) attributes {dimension_semantics = [#tpu.dimension_semantics<parallel>, #tpu.dimension_semantics<parallel>], iteration_bounds = array<i64: 2, 1>, scalar_prefetch = 0 : i64, scratch_operands = 0 : i64, tpu.core_type = #tpu.core_type<tc>, window_params = [{transform_indices = @transform_0, window_bounds = array<i64: 1, 4, 256>}, {pipeline_mode = #tpu.pipeline_mode<synchronous>, transform_indices = @transform_1, window_bounds = array<i64: 4, 32>}, {pipeline_mode = #tpu.pipeline_mode<synchronous>, transform_indices = @transform_2, window_bounds = array<i64: 3, 32>}, {transform_indices = @transform_3, window_bounds = array<i64: 1, 256, 32>}]} {
    %c0 = arith.constant 0 : index
    %c0_0 = arith.constant 0 : index
    %0 = vector.load %arg3[%c0, %c0_0] : memref<4x32xf32, #tpu.memory_space<vmem>>, vector<4x32xf32>
    %c0_1 = arith.constant 0 : index
    %c0_2 = arith.constant 0 : index
    %1 = vector.load %arg4[%c0_1, %c0_2] : memref<3x32xf32, #tpu.memory_space<vmem>>, vector<3x32xf32>
    %2 = vector.extract_strided_slice %1 {offsets = [0, 0], sizes = [1, 32], strides = [1, 1]} : vector<3x32xf32> to vector<1x32xf32>
    %3 = vector.extract_strided_slice %1 {offsets = [1, 0], sizes = [1, 32], strides = [1, 1]} : vector<3x32xf32> to vector<1x32xf32>
    %4 = vector.extract_strided_slice %1 {offsets = [2, 0], sizes = [1, 32], strides = [1, 1]} : vector<3x32xf32> to vector<1x32xf32>
    %c0_3 = arith.constant 0 : index
    %c0_4 = arith.constant 0 : index
    %c0_5 = arith.constant 0 : index
    %5 = vector.load %arg2[%c0_3, %c0_4, %c0_5] : memref<1x4x256xf32, #tpu.memory_space<vmem>>, vector<1x4x256xf32>
    %6 = vector.shape_cast %5 : vector<1x4x256xf32> to vector<4x256xf32>
    %cst = arith.constant dense<0.000000e+00> : vector<256x32xf32>
    %7 = tpu.matmul %6, %0, %cst {dimension_numbers = #tpu.dot_dimension_numbers<[0], [0], [1], [1], [0, 1, 1, 1], [], []>} : vector<4x256xf32>, vector<4x32xf32>, vector<256x32xf32> -> vector<256x32xf32>
    %8 = vector.broadcast %2 : vector<1x32xf32> to vector<256x32xf32>
    %9 = arith.addf %7, %8 : vector<256x32xf32>
    %cst_6 = arith.constant dense<0.000000e+00> : vector<256xf32>
    %10 = vector.multi_reduction <add>, %9, %cst_6 [1] : vector<256x32xf32> to vector<256xf32>
    %11 = vector.shape_cast %10 : vector<256xf32> to vector<256x1xf32>
    %cst_7 = arith.constant 3.200000e+01 : f32
    %12 = vector.broadcast %cst_7 : f32 to vector<256x1xf32>
    %13 = arith.divf %11, %12 : vector<256x1xf32>
    %14 = arith.mulf %9, %9 : vector<256x32xf32>
    %cst_8 = arith.constant dense<0.000000e+00> : vector<256xf32>
    %15 = vector.multi_reduction <add>, %14, %cst_8 [1] : vector<256x32xf32> to vector<256xf32>
    %16 = vector.shape_cast %15 : vector<256xf32> to vector<256x1xf32>
    %cst_9 = arith.constant 3.200000e+01 : f32
    %17 = vector.broadcast %cst_9 : f32 to vector<256x1xf32>
    %18 = arith.divf %16, %17 : vector<256x1xf32>
    %19 = arith.mulf %13, %13 : vector<256x1xf32>
    %20 = arith.subf %18, %19 : vector<256x1xf32>
    %cst_10 = arith.constant 0.000000e+00 : f32
    %21 = vector.broadcast %cst_10 : f32 to vector<256x1xf32>
    %22 = arith.maximumf %20, %21 : vector<256x1xf32>
    %cst_11 = arith.constant 9.99999974E-6 : f32
    %23 = vector.broadcast %cst_11 : f32 to vector<256x1xf32>
    %24 = arith.addf %22, %23 : vector<256x1xf32>
    %25 = math.rsqrt %24 : vector<256x1xf32>
    %26 = vector.broadcast %13 : vector<256x1xf32> to vector<256x32xf32>
    %27 = arith.subf %9, %26 : vector<256x32xf32>
    %28 = vector.broadcast %25 : vector<256x1xf32> to vector<256x32xf32>
    %29 = arith.mulf %27, %28 : vector<256x32xf32>
    %30 = vector.broadcast %3 : vector<1x32xf32> to vector<256x32xf32>
    %31 = arith.mulf %29, %30 : vector<256x32xf32>
    %32 = vector.broadcast %4 : vector<1x32xf32> to vector<256x32xf32>
    %33 = arith.addf %31, %32 : vector<256x32xf32>
    %c0_12 = arith.constant 0 : index
    %c0_13 = arith.constant 0 : index
    %c0_14 = arith.constant 0 : index
    %34 = vector.load %arg5[%c0_12, %c0_13, %c0_14] : memref<1x256x32xf32, #tpu.memory_space<vmem>>, vector<1x256x32xf32>
    %35 = vector.shape_cast %34 : vector<1x256x32xf32> to vector<256x32xf32>
    %36 = vector.shape_cast %33 : vector<256x32xf32> to vector<1x256x32xf32>
    tpu.vector_store %arg5[%c0_12, %c0_13, %c0_14], %36 {strides = array<i32>} : memref<1x256x32xf32, #tpu.memory_space<vmem>>, vector<1x256x32xf32>,
    return
  }
  func.func @transform_0(%arg0: i32, %arg1: i32) -> (i32, i32, i32) {
    %c0_i32 = arith.constant 0 : i32
    %c0_i32_0 = arith.constant 0 : i32
    return %arg0, %c0_i32, %arg1 : i32, i32, i32
  }
  func.func @transform_1(%arg0: i32, %arg1: i32) -> (i32, i32) {
    %c0_i32 = arith.constant 0 : i32
    %c0_i32_0 = arith.constant 0 : i32
    %c0_i32_1 = arith.constant 0 : i32
    return %c0_i32, %c0_i32_0 : i32, i32
  }
  func.func @transform_2(%arg0: i32, %arg1: i32) -> (i32, i32) {
    %c0_i32 = arith.constant 0 : i32
    %c0_i32_0 = arith.constant 0 : i32
    %c0_i32_1 = arith.constant 0 : i32
    return %c0_i32, %c0_i32_0 : i32, i32
  }
  func.func @transform_3(%arg0: i32, %arg1: i32) -> (i32, i32, i32) {
    %c0_i32 = arith.constant 0 : i32
    %c0_i32_0 = arith.constant 0 : i32
    return %arg0, %arg1, %c0_i32 : i32, i32, i32
  }
}

</mosaic_0001>

<bundles_post_ra>
// kernel: tpu_custom_call.1
= control target key start
LH: loop header
LB: loop body
LE: loop exit
PB: predicated region body
PF: predicated region fallthrough
CT: control target
= control target key end

     0   :  { %8 = vsyncpa [#allocation3], 0  ;;  %s2791_s0 = inlined_call_operand.hbm [shape: f32[2,4,256], index: 0, kind: input, shape index: {}]   ;;  %s2792_s1 = inlined_call_operand.hbm [shape: f32[4,32], index: 1, kind: input, shape index: {}]   ;;  %s2793_s2 = inlined_call_operand.hbm [shape: f32[3,32], index: 2, kind: input, shape index: {}]   ;;  %s2794_s3 = inlined_call_operand.vmem [shape: f32[2,256,32], index: 3, kind: output, shape index: {}]  }
   0x1   :  { %10 = vsyncpa [#allocation3 + $0x1], 0 }
   0x2   :  { %11 = vsyncpa [#allocation5], 0  ;;  %s1924_s12 = smov 0   ;;  %s1926_s13 = smov 0  }
   0x3   :  { %s1928_s14 = smov 0   ;;  %s1930_s15 = smov 0  }
   0x4   :  { %s1932_s16 = smov 0   ;;  %s1934_s17 = smov 0  }
   0x5 LB: > { %s1556_s18 = sadd.s32 4294967295, %s1899_s17   ;;  %p51_p0 = scmp.ne.s32.totalorder %s1883_s13, %s1879_s12  ;;  %s1899_s17 = sphi %s1934_s17, %s17_s17   ;;  %s1895_s16 = sphi %s1932_s16, %s2804_s16   ;;  %s1891_s15 = sphi %s1930_s15, %s2803_s15   ;;  %s1887_s14 = sphi %s1928_s14, %s2802_s14   ;;  %s1883_s13 = sphi %s1926_s13, %s2801_s13   ;;  %s1879_s12 = sphi %s1924_s12, %s2800_s12  }
   0x6   : > { %p1954_p1 = scmp.eq.s32.totalorder %s1556_s18, 0  ;;  %p1558_p2 = scmp.ge.s32.totalorder %s1899_s17, 1 }
   0x7   : > { %p132_p3 = scmp.lt.s32.totalorder %s1899_s17, 3  ;;  %s144_s23 = sshll.u32 %s2792_s1, 4  ;;  %s145_s23 = int_to_ptr.hbm [resolvable:$true] %s144_s23 }
   0x8   : > { %p1962_p4 = por %p1954_p1, %p51_p0  ;;  %s1901_s25 = smov [#allocation4]  }
   0x9   : > { %p1969_p5 = pnand %p1558_p2, %p132_p3  ;;  %s146_s26 = sshll.u32 %s1901_s25, 4  ;;  %s147_s26 = int_to_ptr.vmem [resolvable:$true] %s146_s26 }
   0xa   : > { %s156_s29 = sshll.u32 %s2793_s2, 4  ;;  %s1902_s30 = smov [#allocation6]   ;;  %s157_s29 = int_to_ptr.hbm [resolvable:$true] %s156_s29 }
   0xb   : > { %p1621_p6 = pneg %p1969_p5  ;;  %s158_s4 = sshll.u32 %s1902_s30, 4  ;;  %s159_s4 = int_to_ptr.vmem [resolvable:$true] %s158_s4 }
   0xc   : > { %s29_s5 = sadd.s32 1, %s1895_s16  ;;  %s38_s6 = sadd.s32 1, %s1887_s14 }
   0xd   : > { %p1622_p7 = pnand %p1621_p6, %p1954_p1  ;;  %p31_p8 = scmp.ge.s32.totalorder %s29_s5, 2 }
   0xe   : > { %p45_p9 = scmp.ne.s32.totalorder %s1887_s14, %s1883_s13  ;;  %p46_p10 = scmp.eq.s32.totalorder %s1899_s17, 0 }
   0xf   : > { %1624 = dma.hbm_to_vmem [thread:$0]  (!%p1622_p7), %s145_s23, 64, %s147_s26, [#allocation5]  }
  0x10   : > { %1627 = dma.hbm_to_vmem [thread:$0]  (!%p1622_p7), %s157_s29, 64, %s159_s4, [#allocation5]  }
  0x11   : > { %p1634_p11 = scmp.lt.s32.totalorder %s1899_s17, 2  ;;  %s2806_s5 = smov (%p31_p8, %s29_s5), 0 }
  0x12   : > { %p1988_p12 = por %p46_p10, %p45_p9  ;;  %s169_s8 = sand.u32 1, %s1887_s14  }
  0x13   : > { %s33_s9 = ssub.s32 %s1895_s16, %s2806_s5  ;;  %s1562_s10 = sshll.u32 %s169_s8, 3 }
  0x14   : > { %p36_p13 = scmp.eq.s32.totalorder %s33_s9, 0  ;;  %s1606_s11 = sshll.u32 %s1895_s16, 3 }
  0x15   : > { %s180_s22 = scalar_lea.hbm %s2791_s0, %s1606_s11  ;;  %s173_s23 = scalar_lea.vmem [#allocation2], %s1562_s10 }
  0x16   : > { %s1997_s12 = scalar_select %p36_p13, %s1887_s14, %s38_s6  }
  0x17   : > { %s184_s25 = sshll.u32 %s173_s23, 4  ;;  %s182_s26 = sshll.u32 %s180_s22, 4  ;;  %s185_s25 = int_to_ptr.vmem [resolvable:$true] %s184_s25  ;;  %s183_s26 = int_to_ptr.hbm [resolvable:$true] %s182_s26 }
  0x18   : > { %p1629_p0 = pnand %p1634_p11, %p1988_p12  ;;  %s170_s27 = scalar_lea.sflag [#allocation3], %s169_s8 }
  0x19   : > { %193 = sbr.rel (%p1969_p5) target bundleno = 859 (0x35b), region = 32  ;;  %s195_s28 = sand.u32 (!%p1969_p5), 1, %s1883_s13  }
  0x1a   : > { %1631 = dma.hbm_to_vmem [thread:$0]  (!%p1629_p0), %s183_s26, 128, %s185_s25, %s170_s27  }
  0x1b   : > { %s1566_s29 = sshll.u32 (!%p1969_p5), %s195_s28, 3  ;;  %s196_s30 = scalar_lea.sflag (!%p1969_p5), [#allocation3], %s195_s28 }
  0x1c   : > { %s199_s4 = scalar_lea.vmem (!%p1969_p5), [#allocation2], %s1566_s29 }
  0x1e   : > { %1870 = dma.done.wait (%p1962_p4), %s196_s30, 128  }
  0x1f   : > { %1872 = vsyncadd (%p1962_p4), %s196_s30, 4294967168 }
  0x20   : > { %1874 = dma.done.wait (%p1954_p1), [#allocation5], 128  }
  0x21   : > { %1876 = vsyncadd (%p1954_p1), [#allocation5], 4294967168  ;;  %v250_v0 = vld [vmem:[%s199_s4] sm:$0xff]  ;;  %v248_v3 = vld [vmem:[#allocation4] sm:$0xf]  ;;  %vm419_vm0 = vcmask 1043456  }
  0x22   : > { %253 = vst [vmem:[#allocation1] ss:$2 sm:$0xff] %v250_v0  ;;  %1571 = vmatpush.msk.msra.mxu0 %vm419_vm0, %v248_v3  ;;  %1608 = vmatpush.msk.msra.mxu1 %vm419_vm0, %v248_v3  ;;  %vm322_vm1 = vcmask 31744   ;;  %v2032_v20 = vld [vmem:[#allocation6] sm:$0x7]  ;;  %vm536_vm2 = vcmask 261120  }
  0x23   : > { %1609 = vmatpush.msk.msra.mxu2 %vm419_vm0, %v248_v3  ;;  %1610 = vmatpush.msk.msra.mxu3 %vm419_vm0, %v248_v3  ;;  %v2036_v21 = vperm.slane %v2032_v20, 0  ;;  %v1903_v44 = vmov 32.0   ;;  %p239_p1 = scmp.lt.s32.totalorder %s1891_s15, 1 }
  0x24   : > { %1689 = vrcp.f32 %v1903_v44 }
  0x25   : > { %s2808_s15 = smov (!%p239_p1, %s1891_s15), 1 }
  0x26   : > { %s1607_s19 = sshll.u32 %s2808_s15, 8 }
  0x27   : > { %s2111_s6 = scalar_lea.vmem %s2794_s3, %s1607_s19 }
  0x29   : > { %v254_v1 = vld.sshfl [vmem:[#allocation1] sm:$0xff pattern:$0x75316420]  ;;  %v255_v2 = vld.sshfl [vmem:[#allocation1 + $0x8] sm:$0xff pattern:$0x75316420] }
  0x2a   : > { %258 = vxpose.xlu0.b32.start.end [1/1] (short) %v254_v1, 128  ;;  %v1690_v46 = vpop.eup %1689 }
  0x2b   : > { %v634_v47 = vmul.f32 32.0, %v1690_v46  ;;  %vm638_vm3 = vweird.f32 %v1690_v46 }
  0x2d   : > { %v635_v49 = vsub.f32 1.0, %v634_v47 }
  0x2f   : > { %v636_v50 = vmul.f32 %v1690_v46, %v635_v49 }
  0x31   : > { %v637_v52 = vadd.f32 %v1690_v46, %v636_v50 }
  0x33   : > { %v2070_v54 = vsel %vm638_vm3, %v1690_v46, %v637_v52 }
  0xaa   : > { %290 = vxpose.xlu0.b32.start.end [1/1] (short) %v255_v2, 128 }
  0xce   : > { %v274_v4 = vpop.trf.xlu0 }
  0xcf   : > { %1572 = vmatmul.msk.f32.vlgmr.msra.gmra.mxu0 %vm322_vm1, %v274_v4 }
  0xd6   : > { %v275_v5 = vpop.trf.xlu0 }
  0xd7   : > { %1573 = vmatmul.msk.f32.gmra.mxu0 %vm322_vm1, %v275_v5 }
  0xde   : > { %v276_v6 = vpop.trf.xlu0 }
  0xdf   : > { %1574 = vmatmul.msk.f32.gmra.mxu0 %vm322_vm1, %v276_v6 }
  0xe6   : > { %v277_v7 = vpop.trf.xlu0 }
  0xe7   : > { %1575 = vmatmul.msk.f32.gmra.mxu0 %vm322_vm1, %v277_v7 }
  0xee   : > { %v278_v8 = vpop.trf.xlu0 }
  0xef   : > { %1576 = vmatmul.msk.f32.gmra.mxu0 %vm322_vm1, %v278_v8 }
  0xf6   : > { %v279_v9 = vpop.trf.xlu0 }
  0xf7   : > { %1577 = vmatmul.msk.f32.gmra.mxu0 %vm322_vm1, %v279_v9 }
  0xfe   : > { %v280_v10 = vpop.trf.xlu0 }
  0xff   : > { %1578 = vmatmul.msk.f32.gmra.mxu0 %vm322_vm1, %v280_v10 }
 0x106   : > { %v281_v11 = vpop.trf.xlu0 }
 0x107   : > { %1579 = vmatmul.msk.f32.gmra.mxu0 %vm322_vm1, %v281_v11 }
 0x10e   : > { %v282_v12 = vpop.trf.xlu0 }
 0x10f   : > { %1580 = vmatmul.msk.f32.vlgmr.msra.gmra.mxu1 %vm322_vm1, %v282_v12 }
 0x116   : > { %v283_v13 = vpop.trf.xlu0 }
 0x117   : > { %1581 = vmatmul.msk.f32.gmra.mxu1 %vm322_vm1, %v283_v13 }
 0x11e   : > { %v284_v14 = vpop.trf.xlu0 }
 0x11f   : > { %1582 = vmatmul.msk.f32.gmra.mxu1 %vm322_vm1, %v284_v14 }
 0x126   : > { %v285_v15 = vpop.trf.xlu0 }
 0x127   : > { %1583 = vmatmul.msk.f32.gmra.mxu1 %vm322_vm1, %v285_v15 }
 0x12e   : > { %v286_v16 = vpop.trf.xlu0 }
 0x12f   : > { %1584 = vmatmul.msk.f32.gmra.mxu1 %vm322_vm1, %v286_v16 }
 0x136   : > { %v287_v17 = vpop.trf.xlu0 }
 0x137   : > { %1585 = vmatmul.msk.f32.gmra.mxu1 %vm322_vm1, %v287_v17  ;;  %v2096_v17 = vperm.slane %v2032_v20, 1 }
 0x13e   : > { %v288_v18 = vpop.trf.xlu0 }
 0x13f   : > { %1586 = vmatmul.msk.f32.gmra.mxu1 %vm322_vm1, %v288_v18 }
 0x146   : > { %v289_v19 = vpop.trf.xlu0 }
 0x147   : > { %1587 = vmatmul.msk.f32.gmra.mxu1 %vm322_vm1, %v289_v19 }
 0x14c   : > { %v440_v22 = vpop.f32.mrf.mxu0 }
 0x14d   : > { %v2039_v23 = vadd.f32 %v440_v22, %v2036_v21 }
 0x14e   : > { %v306_v24 = vpop.trf.xlu0 }
 0x14f   : > { %1588 = vmatmul.msk.f32.vlgmr.msra.gmra.mxu2 %vm322_vm1, %v306_v24  ;;  %v537_v25 = vsel %vm536_vm2, %v2039_v23, 0.0  ;;  %v672_v26 = vmul.f32 %v2039_v23, %v2039_v23 }
 0x150   : > { %538 = vadd.xlane.f32.xlu1 %v537_v25  ;;  %v2102_v25 = vperm.slane %v2032_v20, 2 }
 0x151   : > { %v704_v30 = vsel %vm536_vm2, %v672_v26, 0.0 }
 0x154   : > { %v443_v27 = vpop.f32.mrf.mxu0 }
 0x155   : > { %v2047_v28 = vadd.f32 %v443_v27, %v2036_v21 }
 0x156   : > { %v307_v29 = vpop.trf.xlu0 }
 0x157   : > { %1589 = vmatmul.msk.f32.gmra.mxu2 %vm322_vm1, %v307_v29  ;;  %v673_v31 = vmul.f32 %v2047_v28, %v2047_v28  ;;  %v540_v10 = vsel %vm536_vm2, %v2047_v28, 0.0 }
 0x158   : > { %705 = vadd.xlane.f32.xlu1 %v704_v30 }
 0x159   : > { %v707_v32 = vsel %vm536_vm2, %v673_v31, 0.0 }
 0x15a   : > { %708 = vadd.xlane.f32.xlu2 %v707_v32 }
 0x15c   : > { %v446_v38 = vpop.f32.mrf.mxu0 }
 0x15d   : > { %v2060_v39 = vadd.f32 %v446_v38, %v2036_v21 }
 0x15e   : > { %v308_v33 = vpop.trf.xlu0 }
 0x15f   : > { %1590 = vmatmul.msk.f32.gmra.mxu2 %vm322_vm1, %v308_v33  ;;  %v674_v40 = vmul.f32 %v2060_v39, %v2060_v39  ;;  %v543_v22 = vsel %vm536_vm2, %v2060_v39, 0.0 }
 0x161   : > { %v710_v41 = vsel %vm536_vm2, %v674_v40, 0.0 }
 0x164   : > { %v449_v20 = vpop.f32.mrf.mxu0 }
 0x165   : > { %v2121_v32 = vadd.f32 %v449_v20, %v2036_v21 }
 0x166   : > { %v309_v34 = vpop.trf.xlu0 }
 0x167   : > { %1591 = vmatmul.msk.f32.gmra.mxu2 %vm322_vm1, %v309_v34  ;;  %v675_v34 = vmul.f32 %v2121_v32, %v2121_v32 }
 0x16e   : > { %v310_v35 = vpop.trf.xlu0 }
 0x16f   : > { %1592 = vmatmul.msk.f32.gmra.mxu2 %vm322_vm1, %v310_v35  ;;  %v546_v35 = vsel %vm536_vm2, %v2121_v32, 0.0 }
 0x176   : > { %v311_v36 = vpop.trf.xlu0 }
 0x177   : > { %1593 = vmatmul.msk.f32.gmra.mxu2 %vm322_vm1, %v311_v36  ;;  %v713_v36 = vsel %vm536_vm2, %v675_v34, 0.0 }
 0x17e   : > { %v312_v37 = vpop.trf.xlu0 }
 0x17f   : > { %1594 = vmatmul.msk.f32.gmra.mxu2 %vm322_vm1, %v312_v37  ;;  %v452_v37 = vpop.f32.mrf.mxu0 }
 0x180   : > { %v2130_v40 = vadd.f32 %v452_v37, %v2036_v21 }
 0x182   : > { %v549_v44 = vsel %vm536_vm2, %v2130_v40, 0.0  ;;  %v676_v50 = vmul.f32 %v2130_v40, %v2130_v40 }
 0x186   : > { %v313_v42 = vpop.trf.xlu0 }
 0x187   : > { %1595 = vmatmul.msk.f32.gmra.mxu2 %vm322_vm1, %v313_v42 }
 0x18e   : > { %v314_v43 = vpop.trf.xlu0 }
 0x18f   : > { %1596 = vmatmul.msk.f32.vlgmr.msra.gmra.mxu3 %vm322_vm1, %v314_v43 }
 0x193   : > { %711 = vadd.xlane.f32.xlu0 %v710_v41 }
 0x196   : > { %v315_v45 = vpop.trf.xlu0 }
 0x197   : > { %1597 = vmatmul.msk.f32.gmra.mxu3 %vm322_vm1, %v315_v45 }
 0x19e   : > { %v316_v48 = vpop.trf.xlu0 }
 0x19f   : > { %1598 = vmatmul.msk.f32.gmra.mxu3 %vm322_vm1, %v316_v48 }
 0x1a6   : > { %v317_v51 = vpop.trf.xlu0 }
 0x1a7   : > { %1599 = vmatmul.msk.f32.gmra.mxu3 %vm322_vm1, %v317_v51  ;;  %v455_v51 = vpop.f32.mrf.mxu0 }
 0x1ae   : > { %v318_v55 = vpop.trf.xlu0 }
 0x1af   : > { %1600 = vmatmul.msk.f32.gmra.mxu3 %vm322_vm1, %v318_v55  ;;  %v716_v55 = vsel %vm536_vm2, %v676_v50, 0.0 }
 0x1b6   : > { %v319_v61 = vpop.trf.xlu0 }
 0x1b7   : > { %1601 = vmatmul.msk.f32.gmra.mxu3 %vm322_vm1, %v319_v61 }
 0x1be   : > { %v320_v3 = vpop.trf.xlu0 }
 0x1bf   : > { %1602 = vmatmul.msk.f32.gmra.mxu3 %vm322_vm1, %v320_v3 }
 0x1c3   : > { %v539_v53 = vpop.xlane.xlu1 %538 }
 0x1c4   : > { %v640_v56 = vmul.f32 %v2070_v54, %v539_v53  ;;  %v2153_v53 = vadd.f32 %v455_v51, %v2036_v21 }
 0x1c6   : > { %v832_v58 = vmul.f32 %v640_v56, %v640_v56  ;;  %v321_v11 = vpop.trf.xlu0  ;;  %v1280_v16 = vsub.f32 %v2039_v23, %v640_v56  ;;  %v677_v56 = vmul.f32 %v2153_v53, %v2153_v53 }
 0x1c7   : > { %1603 = vmatmul.msk.f32.gmra.mxu3 %vm322_vm1, %v321_v11 }
 0x1cb   : > { %v706_v57 = vpop.xlane.xlu1 %705 }
 0x1cc   : > { %v800_v59 = vmul.f32 %v706_v57, %v2070_v54  ;;  %v552_v57 = vsel %vm536_vm2, %v2153_v53, 0.0 }
 0x1ce   : > { %v864_v60 = vsub.f32 %v800_v59, %v832_v58  ;;  %v719_v58 = vsel %vm536_vm2, %v677_v56, 0.0  ;;  %v458_v59 = vpop.f32.mrf.mxu0 }
 0x1cf   : > { %v2162_v61 = vadd.f32 %v458_v59, %v2036_v21 }
 0x1d0   : > { %v896_v62 = vmax.f32 %v864_v60, 0.0 }
 0x1d2   : > { %v928_v63 = vadd.f32 1e-05, %v896_v62  ;;  %v488_v0 = vpop.f32.mrf.mxu2 }
 0x1d3   : > { %v2077_v1 = vadd.f32 %v488_v0, %v2036_v21 }
 0x1d4   : > { %1691 = vrsqrt.f32 %v928_v63  ;;  %vm966_vm5 = vweird.f32 %v928_v63 }
 0x1d5   : > { %v585_v2 = vsel %vm536_vm2, %v2077_v1, 0.0  ;;  %v688_v29 = vmul.f32 %v2077_v1, %v2077_v1 }
 0x1d6   : > { %586 = vadd.xlane.f32.xlu1 %v585_v2  ;;  %v555_v2 = vsel %vm536_vm2, %v2162_v61, 0.0 }
 0x1d7   : > { %v752_v33 = vsel %vm536_vm2, %v688_v29, 0.0 }
 0x1da   : > { %v1692_v4 = vpop.eup %1691  ;;  %v491_v5 = vpop.f32.mrf.mxu2 }
 0x1db   : > { %v961_v6 = vmul.f32 %v1692_v4, %v928_v63  ;;  %v2083_v7 = vadd.f32 %v491_v5, %v2036_v21  ;;  %vm967_vm4 = vweird.f32 %v1692_v4 }
 0x1dc   : > { %vm968_vm6 = vmor %vm966_vm5, %vm967_vm4 }
 0x1dd   : > { %v962_v8 = vmul.f32 %v1692_v4, %v961_v6  ;;  %v588_v9 = vsel %vm536_vm2, %v2083_v7, 0.0  ;;  %v689_v14 = vmul.f32 %v2083_v7, %v2083_v7 }
 0x1de   : > { %589 = vadd.xlane.f32.xlu2 %v588_v9  ;;  %541 = vadd.xlane.f32.xlu1 %v540_v10  ;;  %v678_v9 = vmul.f32 %v2162_v61, %v2162_v61  ;;  %v461_v10 = vpop.f32.mrf.mxu0 }
 0x1df   : > { %v963_v12 = vmul.f32 0.5, %v962_v8  ;;  %v755_v24 = vsel %vm536_vm2, %v689_v14, 0.0 }
 0x1e1   : > { %v964_v13 = vsub.f32 1.5, %v963_v12  ;;  %v2185_v12 = vadd.f32 %v461_v10, %v2036_v21 }
 0x1e2   : > { %v494_v18 = vpop.f32.mrf.mxu2 }
 0x1e3   : > { %v965_v15 = vmul.f32 %v1692_v4, %v964_v13  ;;  %v2105_v23 = vadd.f32 %v494_v18, %v2036_v21  ;;  %v722_v13 = vsel %vm536_vm2, %v678_v9, 0.0  ;;  %v679_v14 = vmul.f32 %v2185_v12, %v2185_v12  ;;  %v464_v18 = vpop.f32.mrf.mxu1 }
 0x1e5   : > { %v969_v19 = vsel %vm968_vm6, %v1692_v4, %v965_v15  ;;  %v591_v31 = vsel %vm536_vm2, %v2105_v23, 0.0  ;;  %v690_v41 = vmul.f32 %v2105_v23, %v2105_v23  ;;  %v558_v15 = vsel %vm536_vm2, %v2185_v12, 0.0 }
 0x1e6   : > { %v1312_v26 = vmul.f32 %v1280_v16, %v969_v19  ;;  %544 = vadd.xlane.f32.xlu2 %v543_v22  ;;  %756 = vadd.xlane.f32.xlu1 %v755_v24  ;;  %v725_v16 = vsel %vm536_vm2, %v679_v14, 0.0  ;;  %v2194_v22 = vadd.f32 %v464_v18, %v2036_v21 }
 0x1e7   : > { %v758_v43 = vsel %vm536_vm2, %v690_v41, 0.0 }
 0x1e8   : > { %v1345_v27 = vmul.f32 %v2096_v17, %v1312_v26  ;;  %v561_v29 = vsel %vm536_vm2, %v2194_v22, 0.0  ;;  %v680_v37 = vmul.f32 %v2194_v22, %v2194_v22 }
 0x1ea   : > { %v1378_v30 = vadd.f32 %v2102_v25, %v1345_v27  ;;  %v497_v38 = vpop.f32.mrf.mxu2 }
 0x1eb   : > { %v2135_v42 = vadd.f32 %v497_v38, %v2036_v21  ;;  %v467_v38 = vpop.f32.mrf.mxu1 }
 0x1ec   : > { %1410 = vst.msk [vmem:[%s2111_s6] sm:$0xff] %vm536_vm2, %v1378_v30 }
 0x1ed   : > { %v691_v45 = vmul.f32 %v2135_v42, %v2135_v42  ;;  %v594_v46 = vsel %vm536_vm2, %v2135_v42, 0.0 }
 0x1ee   : > { %753 = vadd.xlane.f32.xlu2 %v752_v33  ;;  %592 = vadd.xlane.f32.xlu1 %v591_v31 }
 0x1ef   : > { %v761_v47 = vsel %vm536_vm2, %v691_v45, 0.0 }
 0x1f2   : > { %v500_v48 = vpop.f32.mrf.mxu2 }
 0x1f3   : > { %v2146_v49 = vadd.f32 %v500_v48, %v2036_v21  ;;  %v470_v56 = vpop.f32.mrf.mxu1 }
 0x1f5   : > { %v597_v52 = vsel %vm536_vm2, %v2146_v49, 0.0  ;;  %v692_v62 = vmul.f32 %v2146_v49, %v2146_v49 }
 0x1f6   : > { %547 = vadd.xlane.f32.xlu2 %v546_v35  ;;  %714 = vadd.xlane.f32.xlu1 %v713_v36  ;;  %v709_v35 = vpop.xlane.xlu2 %708 }
 0x1f7   : > { %v764_v0 = vsel %vm536_vm2, %v692_v62, 0.0  ;;  %v801_v50 = vmul.f32 %v709_v35, %v2070_v54 }
 0x1fa   : > { %v503_v60 = vpop.f32.mrf.mxu2 }
 0x1fb   : > { %v2167_v63 = vadd.f32 %v503_v60, %v2036_v21 }
 0x1fd   : > { %v693_v3 = vmul.f32 %v2167_v63, %v2167_v63  ;;  %v600_v4 = vsel %vm536_vm2, %v2167_v63, 0.0 }
 0x1fe   : > { %759 = vadd.xlane.f32.xlu2 %v758_v43  ;;  %550 = vadd.xlane.f32.xlu1 %v549_v44  ;;  %v2217_v43 = vadd.f32 %v467_v38, %v2036_v21  ;;  %v728_v44 = vsel %vm536_vm2, %v680_v37, 0.0 }
 0x1ff   : > { %v767_v5 = vsel %vm536_vm2, %v693_v3, 0.0 }
 0x202   : > { %v506_v6 = vpop.f32.mrf.mxu2 }
 0x203   : > { %v2178_v8 = vadd.f32 %v506_v6, %v2036_v21 }
 0x205   : > { %v603_v11 = vsel %vm536_vm2, %v2178_v8, 0.0  ;;  %v694_v24 = vmul.f32 %v2178_v8, %v2178_v8 }
 0x206   : > { %595 = vadd.xlane.f32.xlu2 %v594_v46  ;;  %762 = vadd.xlane.f32.xlu1 %v761_v47  ;;  %v681_v47 = vmul.f32 %v2217_v43, %v2217_v43  ;;  %v712_v59 = vpop.xlane.xlu0 %711 }
 0x207   : > { %v770_v27 = vsel %vm536_vm2, %v694_v24, 0.0 }
 0x20a   : > { %v509_v19 = vpop.f32.mrf.mxu2 }
 0x20b   : > { %v2199_v26 = vadd.f32 %v509_v19, %v2036_v21 }
 0x20d   : > { %v695_v20 = vmul.f32 %v2199_v26, %v2199_v26  ;;  %v606_v30 = vsel %vm536_vm2, %v2199_v26, 0.0 }
 0x20e   : > { %717 = vadd.xlane.f32.xlu2 %v716_v55  ;;  %598 = vadd.xlane.f32.xlu1 %v597_v52  ;;  %v564_v52 = vsel %vm536_vm2, %v2217_v43, 0.0  ;;  %v731_v55 = vsel %vm536_vm2, %v681_v47, 0.0 }
 0x20f   : > { %v773_v31 = vsel %vm536_vm2, %v695_v20, 0.0 }
 0x212   : > { %v512_v33 = vpop.f32.mrf.mxu3 }
 0x213   : > { %v2210_v34 = vadd.f32 %v512_v33, %v2036_v21 }
 0x215   : > { %v609_v41 = vsel %vm536_vm2, %v2210_v34, 0.0 }
 0x216   : > { %553 = vadd.xlane.f32.xlu2 %v552_v57  ;;  %720 = vadd.xlane.f32.xlu1 %v719_v58 }
 0x21a   : > { %v515_v62 = vpop.f32.mrf.mxu3 }
 0x21e   : > { %765 = vadd.xlane.f32.xlu2 %v764_v0  ;;  %556 = vadd.xlane.f32.xlu1 %v555_v2  ;;  %v2235_v0 = vadd.f32 %v470_v56, %v2036_v21 }
 0x220   : > { %v567_v18 = vsel %vm536_vm2, %v2235_v0, 0.0 }
 0x226   : > { %601 = vadd.xlane.f32.xlu2 %v600_v4  ;;  %768 = vadd.xlane.f32.xlu1 %v767_v5  ;;  %v696_v4 = vmul.f32 %v2210_v34, %v2210_v34 }
 0x22e   : > { %723 = vadd.xlane.f32.xlu2 %v722_v13  ;;  %604 = vadd.xlane.f32.xlu1 %v603_v11  ;;  %v2246_v11 = vadd.f32 %v515_v62, %v2036_v21  ;;  %v802_v13 = vmul.f32 %v712_v59, %v2070_v54  ;;  %v682_v59 = vmul.f32 %v2235_v0, %v2235_v0 }
 0x236   : > { %559 = vadd.xlane.f32.xlu2 %v558_v15  ;;  %726 = vadd.xlane.f32.xlu1 %v725_v16  ;;  %v776_v16 = vsel %vm536_vm2, %v696_v4, 0.0 }
 0x23e   : > { %771 = vadd.xlane.f32.xlu2 %v770_v27  ;;  %562 = vadd.xlane.f32.xlu1 %v561_v29  ;;  %v697_v29 = vmul.f32 %v2246_v11, %v2246_v11 }
 0x246   : > { %607 = vadd.xlane.f32.xlu2 %v606_v30  ;;  %774 = vadd.xlane.f32.xlu1 %v773_v31 }
 0x249   : > { %v587_v36 = vpop.xlane.xlu1 %586 }
 0x24a   : > { %v2255_v19 = vmul.f32 %v2070_v54, %v587_v36 }
 0x24c   : > { %v848_v37 = vmul.f32 %v2255_v19, %v2255_v19 }
 0x24e   : > { %729 = vadd.xlane.f32.xlu2 %v728_v44  ;;  %610 = vadd.xlane.f32.xlu1 %v609_v41  ;;  %v612_v44 = vsel %vm536_vm2, %v2246_v11, 0.0 }
 0x251   : > { %v590_v45 = vpop.xlane.xlu2 %589  ;;  %v542_v46 = vpop.xlane.xlu1 %541 }
 0x252   : > { %v2223_v48 = vmul.f32 %v2070_v54, %v542_v46  ;;  %v2232_v58 = vmul.f32 %v2070_v54, %v590_v45  ;;  %v779_v45 = vsel %vm536_vm2, %v697_v29, 0.0  ;;  %v518_v46 = vpop.f32.mrf.mxu3 }
 0x254   : > { %v833_v51 = vmul.f32 %v2223_v48, %v2223_v48  ;;  %v849_v10 = vmul.f32 %v2232_v58, %v2232_v58 }
 0x256   : > { %v865_v57 = vsub.f32 %v801_v50, %v833_v51  ;;  %565 = vadd.xlane.f32.xlu2 %v564_v52  ;;  %732 = vadd.xlane.f32.xlu1 %v731_v55  ;;  %v2272_v52 = vadd.f32 %v518_v46, %v2036_v21  ;;  %v473_v55 = vpop.f32.mrf.mxu1 }
 0x258   : > { %v897_v60 = vmax.f32 %v865_v57, 0.0 }
 0x259   : > { %v545_v2 = vpop.xlane.xlu2 %544  ;;  %v757_v3 = vpop.xlane.xlu1 %756 }
 0x25a   : > { %v929_v5 = vadd.f32 1e-05, %v897_v60  ;;  %v2240_v6 = vmul.f32 %v2070_v54, %v545_v2  ;;  %v817_v9 = vmul.f32 %v757_v3, %v2070_v54 }
 0x25c   : > { %1693 = vrsqrt.f32 %v929_v5  ;;  %v834_v14 = vmul.f32 %v2240_v6, %v2240_v6  ;;  %v881_v15 = vsub.f32 %v817_v9, %v849_v10  ;;  %v2279_v9 = vadd.f32 %v473_v55, %v2036_v21 }
 0x25d   : > { %vm976_vm8 = vweird.f32 %v929_v5 }
 0x25e   : > { %v866_v24 = vsub.f32 %v802_v13, %v834_v14  ;;  %777 = vadd.xlane.f32.xlu2 %v776_v16  ;;  %568 = vadd.xlane.f32.xlu1 %v567_v18  ;;  %v913_v27 = vmax.f32 %v881_v15, 0.0  ;;  %v615_v13 = vsel %vm536_vm2, %v2272_v52, 0.0  ;;  %v1281_v18 = vsub.f32 %v2047_v28, %v2223_v48 }
 0x25f   : > { %v683_v28 = vmul.f32 %v2279_v9, %v2279_v9  ;;  %v1297_v48 = vsub.f32 %v2083_v7, %v2232_v58 }
 0x260   : > { %v898_v20 = vmax.f32 %v866_v24, 0.0  ;;  %v2259_v30 = vadd.f32 1e-05, %v913_v27  ;;  %v734_v27 = vsel %vm536_vm2, %v682_v59, 0.0 }
 0x261   : > { %v754_v31 = vpop.xlane.xlu2 %753  ;;  %v593_v33 = vpop.xlane.xlu1 %592 }
 0x262   : > { %v1694_v35 = vpop.eup %1693  ;;  %v2263_v38 = vadd.f32 1e-05, %v898_v20  ;;  %v816_v36 = vmul.f32 %v754_v31, %v2070_v54  ;;  %1695 = vrsqrt.f32 %v2259_v30  ;;  %vm1136_vm10 = vweird.f32 %v2259_v30 }
 0x263   : > { %v971_v41 = vmul.f32 %v1694_v35, %v929_v5  ;;  %vm977_vm7 = vweird.f32 %v1694_v35 }
 0x264   : > { %1697 = vrsqrt.f32 %v2263_v38  ;;  %v880_v47 = vsub.f32 %v816_v36, %v848_v37  ;;  %vm978_vm9 = vmor %vm976_vm8, %vm977_vm7  ;;  %vm986_vm13 = vweird.f32 %v2263_v38 }
 0x265   : > { %v972_v50 = vmul.f32 %v1694_v35, %v971_v41  ;;  %v570_v41 = vsel %vm536_vm2, %v2279_v9, 0.0 }
 0x266   : > { %v912_v51 = vmax.f32 %v880_v47, 0.0  ;;  %613 = vadd.xlane.f32.xlu2 %v612_v44  ;;  %780 = vadd.xlane.f32.xlu1 %v779_v45  ;;  %v2302_v44 = vmul.f32 %v2070_v54, %v593_v33 }
 0x267   : > { %v973_v56 = vmul.f32 0.5, %v972_v50 }
 0x268   : > { %v2274_v57 = vadd.f32 1e-05, %v912_v51  ;;  %v1696_v60 = vpop.eup %1695 }
 0x269   : > { %v974_v62 = vsub.f32 1.5, %v973_v56  ;;  %v548_v2 = vpop.xlane.xlu2 %547  ;;  %v715_v3 = vpop.xlane.xlu1 %714  ;;  %v1131_v10 = vmul.f32 %v1696_v60, %v2259_v30  ;;  %vm1137_vm11 = vweird.f32 %v1696_v60 }
 0x26a   : > { %v1698_v4 = vpop.eup %1697  ;;  %1699 = vrsqrt.f32 %v2274_v57  ;;  %v2287_v16 = vmul.f32 %v2070_v54, %v548_v2  ;;  %v803_v37 = vmul.f32 %v715_v3, %v2070_v54  ;;  %vm1138_vm14 = vmor %vm1136_vm10, %vm1137_vm11  ;;  %vm1126_vm1 = vweird.f32 %v2274_v57 }
 0x26b   : > { %v975_v14 = vmul.f32 %v1694_v35, %v974_v62  ;;  %v981_v15 = vmul.f32 %v1698_v4, %v2263_v38  ;;  %v1132_v24 = vmul.f32 %v1696_v60, %v1131_v10  ;;  %vm987_vm12 = vweird.f32 %v1698_v4 }
 0x26c   : > { %v835_v31 = vmul.f32 %v2287_v16, %v2287_v16  ;;  %v850_v62 = vmul.f32 %v2302_v44, %v2302_v44  ;;  %vm988_vm15 = vmor %vm986_vm13, %vm987_vm12 }
 0x26d   : > { %v979_v29 = vsel %vm978_vm9, %v1694_v35, %v975_v14  ;;  %v982_v20 = vmul.f32 %v1698_v4, %v981_v15  ;;  %v1133_v36 = vmul.f32 0.5, %v1132_v24  ;;  %v476_v24 = vpop.f32.mrf.mxu1 }
 0x26e   : > { %v1313_v5 = vmul.f32 %v1281_v18, %v979_v29  ;;  %735 = vadd.xlane.f32.xlu2 %v734_v27  ;;  %616 = vadd.xlane.f32.xlu1 %v615_v13  ;;  %v867_v45 = vsub.f32 %v803_v37, %v835_v31  ;;  %v1282_v13 = vsub.f32 %v2060_v39, %v2240_v6  ;;  %v737_v18 = vsel %vm536_vm2, %v683_v28, 0.0 }
 0x26f   : > { %v983_v35 = vmul.f32 0.5, %v982_v20  ;;  %v1134_v50 = vsub.f32 1.5, %v1133_v36  ;;  %v2323_v39 = vadd.f32 %v476_v24, %v2036_v21 }
 0x270   : > { %v1700_v46 = vpop.eup %1699  ;;  %v1346_v47 = vmul.f32 %v2096_v17, %v1313_v5  ;;  %v899_v56 = vmax.f32 %v867_v45, 0.0  ;;  %v1296_v45 = vsub.f32 %v2077_v1, %v2255_v19 }
 0x271   : > { %v984_v51 = vsub.f32 1.5, %v983_v35  ;;  %v1121_v55 = vmul.f32 %v1700_v46, %v2274_v57  ;;  %v760_v59 = vpop.xlane.xlu2 %759  ;;  %v551_v7 = vpop.xlane.xlu1 %550  ;;  %v1135_v33 = vmul.f32 %v1696_v60, %v1134_v50  ;;  %vm1127_vm0 = vweird.f32 %v1700_v46 }
 0x272   : > { %v1379_v58 = vadd.f32 %v2102_v25, %v1346_v47  ;;  %v818_v2 = vmul.f32 %v760_v59, %v2070_v54  ;;  %v2312_v10 = vadd.f32 1e-05, %v899_v56  ;;  %v698_v35 = vmul.f32 %v2272_v52, %v2272_v52  ;;  %vm1128_vm3 = vmor %vm1126_vm1, %vm1127_vm0 }
 0x273   : > { %v985_v3 = vmul.f32 %v1698_v4, %v984_v51  ;;  %v1122_v30 = vmul.f32 %v1700_v46, %v1121_v55  ;;  %v1139_v14 = vsel %vm1138_vm14, %v1696_v60, %v1135_v33 }
 0x274   : > { %1411 = vst.msk [vmem:[%s2111_s6 + $0x8] sm:$0xff] %vm536_vm2, %v1379_v58  ;;  %v882_v15 = vsub.f32 %v818_v2, %v850_v62  ;;  %v1329_v29 = vmul.f32 %v1297_v48, %v1139_v14  ;;  %1701 = vrsqrt.f32 %v2312_v10  ;;  %v2351_v58 = vmul.f32 %v2070_v54, %v551_v7 }
 0x275   : > { %v989_v27 = vsel %vm988_vm15, %v1698_v4, %v985_v3  ;;  %v1123_v20 = vmul.f32 0.5, %v1122_v30  ;;  %v521_v4 = vpop.f32.mrf.mxu3  ;;  %v782_v33 = vsel %vm536_vm2, %v698_v35, 0.0  ;;  %vm996_vm5 = vweird.f32 %v2312_v10 }
 0x276   : > { %v1314_v38 = vmul.f32 %v1282_v13, %v989_v27  ;;  %v914_v31 = vmax.f32 %v882_v15, 0.0  ;;  %571 = vadd.xlane.f32.xlu2 %v570_v41  ;;  %738 = vadd.xlane.f32.xlu1 %v737_v18  ;;  %v1362_v37 = vmul.f32 %v2096_v17, %v1329_v29  ;;  %v2343_v56 = vadd.f32 %v521_v4, %v2036_v21 }
 0x277   : > { %v1124_v5 = vsub.f32 1.5, %v1123_v20  ;;  %v836_v24 = vmul.f32 %v2351_v58, %v2351_v58 }
 0x278   : > { %v1347_v6 = vmul.f32 %v2096_v17, %v1314_v38  ;;  %v2326_v60 = vadd.f32 1e-05, %v914_v31  ;;  %v1395_v36 = vadd.f32 %v2102_v25, %v1362_v37  ;;  %v699_v30 = vmul.f32 %v2343_v56, %v2343_v56 }
 0x279   : > { %v1125_v28 = vmul.f32 %v1700_v46, %v1124_v5  ;;  %v596_v41 = vpop.xlane.xlu2 %595  ;;  %v763_v48 = vpop.xlane.xlu1 %762  ;;  %v618_v5 = vsel %vm536_vm2, %v2343_v56, 0.0 }
 0x27a   : > { %v1380_v47 = vadd.f32 %v2102_v25, %v1347_v6  ;;  %1703 = vrsqrt.f32 %v2326_v60  ;;  %v2337_v50 = vmul.f32 %v2070_v54, %v596_v41  ;;  %v1702_v51 = vpop.eup %1701  ;;  %1427 = vst.msk [vmem:[%s2111_s6 + $0x88] sm:$0xff] %vm536_vm2, %v1395_v36  ;;  %v819_v55 = vmul.f32 %v763_v48, %v2070_v54 }
 0x27b   : > { %v1129_v57 = vsel %vm1128_vm3, %v1700_v46, %v1125_v28  ;;  %v991_v19 = vmul.f32 %v1702_v51, %v2312_v10  ;;  %v573_v46 = vsel %vm536_vm2, %v2323_v39, 0.0  ;;  %vm997_vm4 = vweird.f32 %v1702_v51 }
 0x27c   : > { %1412 = vst.msk [vmem:[%s2111_s6 + $0x10] sm:$0xff] %vm536_vm2, %v1380_v47  ;;  %v1328_v1 = vmul.f32 %v1296_v45, %v1129_v57  ;;  %v851_v59 = vmul.f32 %v2337_v50, %v2337_v50  ;;  %v785_v6 = vsel %vm536_vm2, %v699_v30, 0.0  ;;  %v1283_v41 = vsub.f32 %v2121_v32, %v2287_v16  ;;  %vm998_vm6 = vmor %vm996_vm5, %vm997_vm4 }
 0x27d   : > { %v992_v2 = vmul.f32 %v1702_v51, %v991_v19  ;;  %v524_v28 = vpop.f32.mrf.mxu3  ;;  %vm1146_vm8 = vweird.f32 %v2326_v60 }
 0x27e   : > { %v1361_v62 = vmul.f32 %v2096_v17, %v1328_v1  ;;  %v883_v3 = vsub.f32 %v819_v55, %v851_v59  ;;  %783 = vadd.xlane.f32.xlu2 %v782_v33  ;;  %574 = vadd.xlane.f32.xlu1 %v573_v46  ;;  %v2376_v55 = vadd.f32 %v524_v28, %v2036_v21  ;;  %v479_v33 = vpop.f32.mrf.mxu1 }
 0x27f   : > { %v993_v7 = vmul.f32 0.5, %v992_v2  ;;  %v1298_v46 = vsub.f32 %v2105_v23, %v2302_v44  ;;  %v2398_v44 = vadd.f32 %v479_v33, %v2036_v21 }
 0x280   : > { %v1704_v13 = vpop.eup %1703  ;;  %v1394_v14 = vadd.f32 %v2102_v25, %v1361_v62  ;;  %v915_v15 = vmax.f32 %v883_v3, 0.0  ;;  %v621_v30 = vsel %vm536_vm2, %v2376_v55, 0.0 }
 0x281   : > { %v1141_v18 = vmul.f32 %v1704_v13, %v2326_v60  ;;  %v718_v27 = vpop.xlane.xlu2 %717  ;;  %v599_v29 = vpop.xlane.xlu1 %598  ;;  %v994_v20 = vsub.f32 1.5, %v993_v7  ;;  %vm1147_vm7 = vweird.f32 %v1704_v13 }
 0x282   : > { %1426 = vst.msk [vmem:[%s2111_s6 + $0x80] sm:$0xff] %vm536_vm2, %v1394_v14  ;;  %v2365_v38 = vadd.f32 1e-05, %v915_v15  ;;  %v804_v31 = vmul.f32 %v718_v27, %v2070_v54  ;;  %vm1148_vm9 = vmor %vm1146_vm8, %vm1147_vm7 }
 0x283   : > { %v1142_v37 = vmul.f32 %v1704_v13, %v1141_v18  ;;  %v995_v4 = vmul.f32 %v1702_v51, %v994_v20 }
 0x284   : > { %1705 = vrsqrt.f32 %v2365_v38  ;;  %v868_v36 = vsub.f32 %v804_v31, %v836_v24  ;;  %vm1156_vm11 = vweird.f32 %v2365_v38 }
 0x285   : > { %v1143_v48 = vmul.f32 0.5, %v1142_v37  ;;  %v999_v35 = vsel %vm998_vm6, %v1702_v51, %v995_v4  ;;  %v684_v51 = vmul.f32 %v2323_v39, %v2323_v39  ;;  %v2406_v37 = vmul.f32 %v2070_v54, %v599_v29 }
 0x286   : > { %v900_v45 = vmax.f32 %v868_v36, 0.0  ;;  %619 = vadd.xlane.f32.xlu2 %v618_v5  ;;  %786 = vadd.xlane.f32.xlu1 %v785_v6  ;;  %v1315_v47 = vmul.f32 %v1283_v41, %v999_v35  ;;  %v685_v41 = vmul.f32 %v2398_v44, %v2398_v44  ;;  %v482_v33 = vpop.f32.mrf.mxu1 }
 0x287   : > { %v1144_v57 = vsub.f32 1.5, %v1143_v48  ;;  %v740_v18 = vsel %vm536_vm2, %v684_v51, 0.0  ;;  %v852_v48 = vmul.f32 %v2406_v37, %v2406_v37 }
 0x288   : > { %v2378_v10 = vadd.f32 1e-05, %v900_v45  ;;  %v1348_v1 = vmul.f32 %v2096_v17, %v1315_v47  ;;  %v743_v51 = vsel %vm536_vm2, %v685_v41, 0.0 }
 0x289   : > { %v1145_v19 = vmul.f32 %v1704_v13, %v1144_v57  ;;  %v554_v32 = vpop.xlane.xlu2 %553  ;;  %v721_v16 = vpop.xlane.xlu1 %720  ;;  %v1299_v57 = vsub.f32 %v2135_v42, %v2337_v50 }
 0x28a   : > { %v1706_v59 = vpop.eup %1705  ;;  %1707 = vrsqrt.f32 %v2378_v10  ;;  %v2388_v62 = vmul.f32 %v2070_v54, %v554_v32  ;;  %v1381_v2 = vadd.f32 %v2102_v25, %v1348_v1  ;;  %v805_v23 = vmul.f32 %v721_v16, %v2070_v54 }
 0x28b   : > { %v1149_v60 = vsel %vm1148_vm9, %v1704_v13, %v1145_v19  ;;  %v1151_v3 = vmul.f32 %v1706_v59, %v2365_v38  ;;  %vm1157_vm10 = vweird.f32 %v1706_v59  ;;  %v576_v16 = vsel %vm536_vm2, %v2398_v44, 0.0 }
 0x28c   : > { %v1330_v14 = vmul.f32 %v1298_v46, %v1149_v60  ;;  %v837_v7 = vmul.f32 %v2388_v62, %v2388_v62  ;;  %1413 = vst.msk [vmem:[%s2111_s6 + $0x18] sm:$0xff] %vm536_vm2, %v1381_v2  ;;  %vm1158_vm12 = vmor %vm1156_vm11, %vm1157_vm10  ;;  %v527_v60 = vpop.f32.mrf.mxu3  ;;  %vm1006_vm14 = vweird.f32 %v2378_v10 }
 0x28d   : > { %v1152_v15 = vmul.f32 %v1706_v59, %v1151_v3 }
 0x28e   : > { %v1363_v13 = vmul.f32 %v2096_v17, %v1330_v14  ;;  %v869_v24 = vsub.f32 %v805_v23, %v837_v7  ;;  %741 = vadd.xlane.f32.xlu2 %v740_v18  ;;  %622 = vadd.xlane.f32.xlu1 %v621_v30  ;;  %v700_v7 = vmul.f32 %v2376_v55, %v2376_v55 }
 0x28f   : > { %v1153_v27 = vmul.f32 0.5, %v1152_v15  ;;  %v1284_v15 = vsub.f32 %v2130_v40, %v2351_v58 }
 0x290   : > { %v1708_v20 = vpop.eup %1707  ;;  %v1396_v31 = vadd.f32 %v2102_v25, %v1363_v13  ;;  %v901_v5 = vmax.f32 %v869_v24, 0.0 }
 0x291   : > { %v1154_v6 = vsub.f32 1.5, %v1153_v27  ;;  %v1001_v4 = vmul.f32 %v1708_v20, %v2378_v10  ;;  %v766_v36 = vpop.xlane.xlu2 %765  ;;  %v557_v28 = vpop.xlane.xlu1 %556  ;;  %vm1007_vm13 = vweird.f32 %v1708_v20 }
 0x292   : > { %1428 = vst.msk [vmem:[%s2111_s6 + $0x90] sm:$0xff] %vm536_vm2, %v1396_v31  ;;  %v2415_v35 = vadd.f32 1e-05, %v901_v5  ;;  %v820_v29 = vmul.f32 %v766_v36, %v2070_v54  ;;  %vm1008_vm15 = vmor %vm1006_vm14, %vm1007_vm13  ;;  %v2444_v31 = vadd.f32 %v527_v60, %v2036_v21  ;;  %v2455_v36 = vmul.f32 %v2070_v54, %v557_v28 }
 0x293   : > { %v1155_v45 = vmul.f32 %v1706_v59, %v1154_v6  ;;  %v1002_v47 = vmul.f32 %v1708_v20, %v1001_v4  ;;  %v788_v6 = vsel %vm536_vm2, %v700_v7, 0.0  ;;  %v1285_v60 = vsub.f32 %v2153_v53, %v2388_v62 }
 0x294   : > { %1709 = vrsqrt.f32 %v2415_v35  ;;  %v884_v1 = vsub.f32 %v820_v29, %v852_v48  ;;  %v701_v29 = vmul.f32 %v2444_v31, %v2444_v31  ;;  %v838_v28 = vmul.f32 %v2455_v36, %v2455_v36 }
 0x295   : > { %v1159_v19 = vsel %vm1158_vm12, %v1706_v59, %v1155_v45  ;;  %v1003_v32 = vmul.f32 0.5, %v1002_v47  ;;  %v2429_v59 = vadd.f32 %v482_v33, %v2036_v21  ;;  %vm1016_vm1 = vweird.f32 %v2415_v35 }
 0x296   : > { %v1331_v46 = vmul.f32 %v1299_v57, %v1159_v19  ;;  %v916_v2 = vmax.f32 %v884_v1, 0.0  ;;  %577 = vadd.xlane.f32.xlu2 %v576_v16  ;;  %744 = vadd.xlane.f32.xlu1 %v743_v51 }
 0x297   : > { %v1004_v38 = vsub.f32 1.5, %v1003_v32  ;;  %v579_v4 = vsel %vm536_vm2, %v2429_v59, 0.0 }
 0x298   : > { %v1364_v42 = vmul.f32 %v2096_v17, %v1331_v46  ;;  %v2426_v50 = vadd.f32 1e-05, %v916_v2  ;;  %v624_v46 = vsel %vm536_vm2, %v2444_v31, 0.0 }
 0x299   : > { %v1005_v3 = vmul.f32 %v1708_v20, %v1004_v38  ;;  %v602_v30 = vpop.xlane.xlu2 %601  ;;  %v769_v14 = vpop.xlane.xlu1 %768 }
 0x29a   : > { %v1710_v23 = vpop.eup %1709  ;;  %v1397_v18 = vadd.f32 %v2102_v25, %v1364_v42  ;;  %1711 = vrsqrt.f32 %v2426_v50  ;;  %v2439_v13 = vmul.f32 %v2070_v54, %v602_v30  ;;  %v821_v27 = vmul.f32 %v769_v14, %v2070_v54  ;;  %v530_v30 = vpop.f32.mrf.mxu3 }
 0x29b   : > { %v1009_v24 = vsel %vm1008_vm15, %v1708_v20, %v1005_v3  ;;  %v1011_v10 = vmul.f32 %v1710_v23, %v2415_v35  ;;  %vm1017_vm0 = vweird.f32 %v1710_v23  ;;  %v791_v42 = vsel %vm536_vm2, %v701_v29, 0.0 }
 0x29c   : > { %1429 = vst.msk [vmem:[%s2111_s6 + $0x98] sm:$0xff] %vm536_vm2, %v1397_v18  ;;  %v1316_v5 = vmul.f32 %v1284_v15, %v1009_v24  ;;  %v853_v40 = vmul.f32 %v2439_v13, %v2439_v13  ;;  %vm1018_vm3 = vmor %vm1016_vm1, %vm1017_vm0  ;;  %v2476_v35 = vadd.f32 %v530_v30, %v2036_v21  ;;  %vm1166_vm5 = vweird.f32 %v2426_v50 }
 0x29d   : > { %v1012_v58 = vmul.f32 %v1710_v23, %v1011_v10 }
 0x29e   : > { %v1349_v20 = vmul.f32 %v2096_v17, %v1316_v5  ;;  %v885_v41 = vsub.f32 %v821_v27, %v853_v40  ;;  %789 = vadd.xlane.f32.xlu2 %v788_v6  ;;  %580 = vadd.xlane.f32.xlu1 %v579_v4  ;;  %v686_v5 = vmul.f32 %v2429_v59, %v2429_v59 }
 0x29f   : > { %v1013_v48 = vmul.f32 0.5, %v1012_v58  ;;  %v485_v58 = vpop.f32.mrf.mxu1  ;;  %v1300_v6 = vsub.f32 %v2146_v49, %v2406_v37 }
 0x2a0   : > { %v1712_v45 = vpop.eup %1711  ;;  %v1382_v47 = vadd.f32 %v2102_v25, %v1349_v20  ;;  %v917_v57 = vmax.f32 %v885_v41, 0.0 }
 0x2a1   : > { %v1014_v1 = vsub.f32 1.5, %v1013_v48  ;;  %v1161_v19 = vmul.f32 %v1712_v45, %v2426_v50  ;;  %v724_v32 = vpop.xlane.xlu2 %723  ;;  %v605_v16 = vpop.xlane.xlu1 %604  ;;  %vm1167_vm4 = vweird.f32 %v1712_v45  ;;  %v627_v48 = vsel %vm536_vm2, %v2476_v35, 0.0 }
 0x2a2   : > { %1414 = vst.msk [vmem:[%s2111_s6 + $0x20] sm:$0xff] %vm536_vm2, %v1382_v47  ;;  %v2465_v51 = vadd.f32 1e-05, %v917_v57  ;;  %v806_v33 = vmul.f32 %v724_v32, %v2070_v54  ;;  %vm1168_vm6 = vmor %vm1166_vm5, %vm1167_vm4  ;;  %v2500_v47 = vadd.f32 %v485_v58, %v2036_v21 }
 0x2a3   : > { %v1015_v2 = vmul.f32 %v1710_v23, %v1014_v1  ;;  %v1162_v38 = vmul.f32 %v1712_v45, %v1161_v19  ;;  %v746_v1 = vsel %vm536_vm2, %v686_v5, 0.0 }
 0x2a4   : > { %1713 = vrsqrt.f32 %v2465_v51  ;;  %v870_v3 = vsub.f32 %v806_v33, %v838_v28  ;;  %vm1176_vm8 = vweird.f32 %v2465_v51  ;;  %v582_v58 = vsel %vm536_vm2, %v2500_v47, 0.0 }
 0x2a5   : > { %v1019_v14 = vsel %vm1018_vm3, %v1710_v23, %v1015_v2  ;;  %v1163_v7 = vmul.f32 0.5, %v1162_v38  ;;  %v533_v38 = vpop.f32.mrf.mxu3 }
 0x2a6   : > { %v1317_v15 = vmul.f32 %v1285_v60, %v1019_v14  ;;  %v902_v18 = vmax.f32 %v870_v3, 0.0  ;;  %625 = vadd.xlane.f32.xlu2 %v624_v46  ;;  %792 = vadd.xlane.f32.xlu1 %v791_v42  ;;  %v2506_v46 = vmul.f32 %v2070_v54, %v605_v16  ;;  %v687_v14 = vmul.f32 %v2500_v47, %v2500_v47 }
 0x2a7   : > { %v1164_v24 = vsub.f32 1.5, %v1163_v7 }
 0x2a8   : > { %v1350_v10 = vmul.f32 %v2096_v17, %v1317_v15  ;;  %v2479_v27 = vadd.f32 1e-05, %v902_v18  ;;  %v854_v7 = vmul.f32 %v2506_v46, %v2506_v46 }
 0x2a9   : > { %v1165_v53 = vmul.f32 %v1712_v45, %v1164_v24  ;;  %v560_v62 = vpop.xlane.xlu2 %559  ;;  %v727_v23 = vpop.xlane.xlu1 %726 }
 0x2aa   : > { %v1714_v40 = vpop.eup %1713  ;;  %v1383_v4 = vadd.f32 %v2102_v25, %v1350_v10  ;;  %1715 = vrsqrt.f32 %v2479_v27  ;;  %v2489_v20 = vmul.f32 %v2070_v54, %v560_v62  ;;  %v807_v37 = vmul.f32 %v727_v23, %v2070_v54 }
 0x2ab   : > { %v1169_v41 = vsel %vm1168_vm6, %v1712_v45, %v1165_v53  ;;  %v1171_v50 = vmul.f32 %v1714_v40, %v2465_v51  ;;  %vm1177_vm7 = vweird.f32 %v1714_v40  ;;  %v2520_v10 = vadd.f32 %v533_v38, %v2036_v21 }
 0x2ac   : > { %1415 = vst.msk [vmem:[%s2111_s6 + $0x28] sm:$0xff] %vm536_vm2, %v1383_v4  ;;  %v1332_v29 = vmul.f32 %v1300_v6, %v1169_v41  ;;  %v839_v49 = vmul.f32 %v2489_v20, %v2489_v20  ;;  %v1301_v53 = vsub.f32 %v2167_v63, %v2439_v13  ;;  %vm1178_vm9 = vmor %vm1176_vm8, %vm1177_vm7  ;;  %v749_v6 = vsel %vm536_vm2, %v687_v14, 0.0 }
 0x2ad   : > { %v1172_v57 = vmul.f32 %v1714_v40, %v1171_v50  ;;  %v703_v63 = vmul.f32 %v2520_v10, %v2520_v10  ;;  %vm1026_vm11 = vweird.f32 %v2479_v27 }
 0x2ae   : > { %v1365_v45 = vmul.f32 %v2096_v17, %v1332_v29  ;;  %v871_v19 = vsub.f32 %v807_v37, %v839_v49  ;;  %747 = vadd.xlane.f32.xlu2 %v746_v1  ;;  %628 = vadd.xlane.f32.xlu1 %v627_v48  ;;  %v630_v1 = vsel %vm536_vm2, %v2520_v10, 0.0 }
 0x2af   : > { %v1173_v32 = vmul.f32 0.5, %v1172_v57 }
 0x2b0   : > { %v1716_v28 = vpop.eup %1715  ;;  %v1398_v33 = vadd.f32 %v2102_v25, %v1365_v45  ;;  %v903_v2 = vmax.f32 %v871_v19, 0.0 }
 0x2b1   : > { %v1174_v42 = vsub.f32 1.5, %v1173_v32  ;;  %v1021_v60 = vmul.f32 %v1716_v28, %v2479_v27  ;;  %v772_v3 = vpop.xlane.xlu2 %771  ;;  %v563_v30 = vpop.xlane.xlu1 %562  ;;  %vm1027_vm10 = vweird.f32 %v1716_v28  ;;  %v797_v27 = vsel %vm536_vm2, %v703_v63, 0.0 }
 0x2b2   : > { %1430 = vst.msk [vmem:[%s2111_s6 + $0xa0] sm:$0xff] %vm536_vm2, %v1398_v33  ;;  %v2515_v15 = vadd.f32 1e-05, %v903_v2  ;;  %v822_v16 = vmul.f32 %v772_v3, %v2070_v54  ;;  %vm1028_vm12 = vmor %vm1026_vm11, %vm1027_vm10  ;;  %v2552_v38 = vmul.f32 %v2070_v54, %v563_v30 }
 0x2b3   : > { %v1175_v18 = vmul.f32 %v1714_v40, %v1174_v42  ;;  %v1022_v24 = vmul.f32 %v1716_v28, %v1021_v60 }
 0x2b4   : > { %1717 = vrsqrt.f32 %v2515_v15  ;;  %v886_v62 = vsub.f32 %v822_v16, %v854_v7  ;;  %v840_v30 = vmul.f32 %v2552_v38, %v2552_v38  ;;  %vm1036_vm14 = vweird.f32 %v2515_v15 }
 0x2b5   : > { %v1179_v23 = vsel %vm1178_vm9, %v1714_v40, %v1175_v18  ;;  %v1023_v5 = vmul.f32 0.5, %v1022_v24  ;;  %v1286_v40 = vsub.f32 %v2162_v61, %v2455_v36 }
 0x2b6   : > { %v1333_v4 = vmul.f32 %v1301_v53, %v1179_v23  ;;  %v918_v51 = vmax.f32 %v886_v62, 0.0  ;;  %583 = vadd.xlane.f32.xlu2 %v582_v58  ;;  %750 = vadd.xlane.f32.xlu1 %v749_v6  ;;  %v702_v53 = vmul.f32 %v2476_v35, %v2476_v35  ;;  %v1287_v6 = vsub.f32 %v2185_v12, %v2489_v20 }
 0x2b7   : > { %v1024_v21 = vsub.f32 1.5, %v1023_v5 }
 0x2b8   : > { %v1366_v13 = vmul.f32 %v2096_v17, %v1333_v4  ;;  %v2531_v41 = vadd.f32 1e-05, %v918_v51  ;;  %v794_v63 = vsel %vm536_vm2, %v702_v53, 0.0 }
 0x2b9   : > { %v1025_v50 = vmul.f32 %v1716_v28, %v1024_v21  ;;  %v608_v48 = vpop.xlane.xlu2 %607  ;;  %v775_v29 = vpop.xlane.xlu1 %774 }
 0x2ba   : > { %v1718_v49 = vpop.eup %1717  ;;  %v1399_v37 = vadd.f32 %v2102_v25, %v1366_v13  ;;  %1719 = vrsqrt.f32 %v2531_v41  ;;  %v2539_v57 = vmul.f32 %v2070_v54, %v608_v48  ;;  %v823_v36 = vmul.f32 %v775_v29, %v2070_v54 }
 0x2bb   : > { %v1029_v45 = vsel %vm1028_vm12, %v1716_v28, %v1025_v50  ;;  %v1031_v61 = vmul.f32 %v1718_v49, %v2515_v15  ;;  %vm1037_vm13 = vweird.f32 %v1718_v49  ;;  %vm1186_vm1 = vweird.f32 %v2531_v41 }
 0x2bc   : > { %1431 = vst.msk [vmem:[%s2111_s6 + $0xa8] sm:$0xff] %vm536_vm2, %v1399_v37  ;;  %v1318_v19 = vmul.f32 %v1286_v40, %v1029_v45  ;;  %v855_v32 = vmul.f32 %v2539_v57, %v2539_v57  ;;  %vm1038_vm15 = vmor %vm1036_vm14, %vm1037_vm13 }
 0x2bd   : > { %v1032_v33 = vmul.f32 %v1718_v49, %v1031_v61 }
 0x2be   : > { %v1351_v2 = vmul.f32 %v2096_v17, %v1318_v19  ;;  %v887_v28 = vsub.f32 %v823_v36, %v855_v32  ;;  %631 = vadd.xlane.f32.xlu2 %v630_v1  ;;  %798 = vadd.xlane.f32.xlu1 %v797_v27 }
 0x2bf   : > { %v1033_v42 = vmul.f32 0.5, %v1032_v33 }
 0x2c0   : > { %v1720_v60 = vpop.eup %1719  ;;  %v1384_v3 = vadd.f32 %v2102_v25, %v1351_v2  ;;  %v919_v14 = vmax.f32 %v887_v28, 0.0 }
 0x2c1   : > { %v1034_v7 = vsub.f32 1.5, %v1033_v42  ;;  %v1181_v16 = vmul.f32 %v1720_v60, %v2531_v41  ;;  %v730_v18 = vpop.xlane.xlu2 %729  ;;  %v611_v24 = vpop.xlane.xlu1 %610  ;;  %vm1187_vm0 = vweird.f32 %v1720_v60 }
 0x2c2   : > { %1416 = vst.msk [vmem:[%s2111_s6 + $0x30] sm:$0xff] %vm536_vm2, %v1384_v3  ;;  %v951_v62 = vadd.f32 1e-05, %v919_v14  ;;  %v808_v23 = vmul.f32 %v730_v18, %v2070_v54  ;;  %vm1188_vm3 = vmor %vm1186_vm1, %vm1187_vm0  ;;  %v2583_v42 = vmul.f32 %v2070_v54, %v611_v24  ;;  %v1303_v24 = vsub.f32 %v2199_v26, %v2539_v57 }
 0x2c3   : > { %v1035_v5 = vmul.f32 %v1718_v49, %v1034_v7  ;;  %v1182_v58 = vmul.f32 %v1720_v60, %v1181_v16  ;;  %v1288_v26 = vsub.f32 %v2194_v22, %v2552_v38 }
 0x2c4   : > { %1721 = vrsqrt.f32 %v951_v62  ;;  %v872_v4 = vsub.f32 %v808_v23, %v840_v30  ;;  %v856_v18 = vmul.f32 %v2583_v42, %v2583_v42  ;;  %vm1196_vm5 = vweird.f32 %v951_v62 }
 0x2c5   : > { %v1039_v51 = vsel %vm1038_vm15, %v1718_v49, %v1035_v5  ;;  %v1183_v21 = vmul.f32 0.5, %v1182_v58  ;;  %v1302_v49 = vsub.f32 %v2178_v8, %v2506_v46 }
 0x2c6   : > { %v1319_v13 = vmul.f32 %v1287_v6, %v1039_v51  ;;  %v904_v40 = vmax.f32 %v872_v4, 0.0  ;;  %795 = vadd.xlane.f32.xlu2 %v794_v63 }
 0x2c7   : > { %v1184_v50 = vsub.f32 1.5, %v1183_v21 }
 0x2c8   : > { %v1352_v48 = vmul.f32 %v2096_v17, %v1319_v13  ;;  %v936_v15 = vadd.f32 1e-05, %v904_v40 }
 0x2c9   : > { %v1185_v29 = vmul.f32 %v1720_v60, %v1184_v50  ;;  %v566_v12 = vpop.xlane.xlu2 %565  ;;  %v733_v20 = vpop.xlane.xlu1 %732 }
 0x2ca   : > { %v1722_v37 = vpop.eup %1721  ;;  %v1385_v1 = vadd.f32 %v2102_v25, %v1352_v48  ;;  %1723 = vrsqrt.f32 %v936_v15  ;;  %v2573_v45 = vmul.f32 %v2070_v54, %v566_v12  ;;  %v809_v19 = vmul.f32 %v733_v20, %v2070_v54 }
 0x2cb   : > { %v1189_v61 = vsel %vm1188_vm3, %v1720_v60, %v1185_v29  ;;  %v1191_v36 = vmul.f32 %v1722_v37, %v951_v62  ;;  %vm1197_vm4 = vweird.f32 %v1722_v37  ;;  %vm1046_vm8 = vweird.f32 %v936_v15 }
 0x2cc   : > { %1417 = vst.msk [vmem:[%s2111_s6 + $0x38] sm:$0xff] %vm536_vm2, %v1385_v1  ;;  %v1334_v27 = vmul.f32 %v1302_v49, %v1189_v61  ;;  %v841_v41 = vmul.f32 %v2573_v45, %v2573_v45  ;;  %vm1198_vm6 = vmor %vm1196_vm5, %vm1197_vm4 }
 0x2cd   : > { %v1192_v32 = vmul.f32 %v1722_v37, %v1191_v36 }
 0x2ce   : > { %v1367_v8 = vmul.f32 %v2096_v17, %v1334_v27  ;;  %v873_v46 = vsub.f32 %v809_v19, %v841_v41 }
 0x2cf   : > { %v1193_v33 = vmul.f32 0.5, %v1192_v32 }
 0x2d0   : > { %v1724_v2 = vpop.eup %1723  ;;  %v1400_v28 = vadd.f32 %v2102_v25, %v1367_v8  ;;  %v905_v60 = vmax.f32 %v873_v46, 0.0 }
 0x2d1   : > { %v1194_v3 = vsub.f32 1.5, %v1193_v33  ;;  %v1041_v14 = vmul.f32 %v1724_v2, %v936_v15  ;;  %v778_v7 = vpop.xlane.xlu2 %777  ;;  %v569_v16 = vpop.xlane.xlu1 %568  ;;  %vm1047_vm7 = vweird.f32 %v1724_v2 }
 0x2d2   : > { %1432 = vst.msk [vmem:[%s2111_s6 + $0xb0] sm:$0xff] %vm536_vm2, %v1400_v28  ;;  %v937_v53 = vadd.f32 1e-05, %v905_v60  ;;  %v824_v30 = vmul.f32 %v778_v7, %v2070_v54  ;;  %vm1048_vm9 = vmor %vm1046_vm8, %vm1047_vm7  ;;  %v2606_v38 = vmul.f32 %v2070_v54, %v569_v16  ;;  %v1289_v16 = vsub.f32 %v2217_v43, %v2573_v45 }
 0x2d3   : > { %v1195_v23 = vmul.f32 %v1722_v37, %v1194_v3  ;;  %v1042_v5 = vmul.f32 %v1724_v2, %v1041_v14  ;;  %v1304_v43 = vsub.f32 %v2210_v34, %v2583_v42 }
 0x2d4   : > { %1725 = vrsqrt.f32 %v937_v53  ;;  %v888_v58 = vsub.f32 %v824_v30, %v856_v18  ;;  %v842_v28 = vmul.f32 %v2606_v38, %v2606_v38  ;;  %vm1056_vm11 = vweird.f32 %v937_v53 }
 0x2d5   : > { %v1199_v6 = vsel %vm1198_vm6, %v1722_v37, %v1195_v23  ;;  %v1043_v4 = vmul.f32 0.5, %v1042_v5 }
 0x2d6   : > { %v1335_v51 = vmul.f32 %v1303_v24, %v1199_v6  ;;  %v920_v21 = vmax.f32 %v888_v58, 0.0 }
 0x2d7   : > { %v1044_v63 = vsub.f32 1.5, %v1043_v4 }
 0x2d8   : > { %v1368_v13 = vmul.f32 %v2096_v17, %v1335_v51  ;;  %v952_v40 = vadd.f32 1e-05, %v920_v21 }
 0x2d9   : > { %v1045_v50 = vmul.f32 %v1724_v2, %v1044_v63  ;;  %v614_v62 = vpop.xlane.xlu2 %613  ;;  %v781_v48 = vpop.xlane.xlu1 %780 }
 0x2da   : > { %v1726_v29 = vpop.eup %1725  ;;  %v1401_v57 = vadd.f32 %v2102_v25, %v1368_v13  ;;  %1727 = vrsqrt.f32 %v952_v40  ;;  %v2597_v12 = vmul.f32 %v2070_v54, %v614_v62  ;;  %v825_v49 = vmul.f32 %v781_v48, %v2070_v54 }
 0x2db   : > { %v1049_v20 = vsel %vm1048_vm9, %v1724_v2, %v1045_v50  ;;  %v1051_v37 = vmul.f32 %v1726_v29, %v937_v53  ;;  %vm1057_vm10 = vweird.f32 %v1726_v29  ;;  %vm1206_vm14 = vweird.f32 %v952_v40 }
 0x2dc   : > { %1433 = vst.msk [vmem:[%s2111_s6 + $0xb8] sm:$0xff] %vm536_vm2, %v1401_v57  ;;  %v1320_v15 = vmul.f32 %v1288_v26, %v1049_v20  ;;  %v857_v1 = vmul.f32 %v2597_v12, %v2597_v12  ;;  %vm1058_vm12 = vmor %vm1056_vm11, %vm1057_vm10 }
 0x2dd   : > { %v1052_v61 = vmul.f32 %v1726_v29, %v1051_v37 }
 0x2de   : > { %v1353_v22 = vmul.f32 %v2096_v17, %v1320_v15  ;;  %v889_v36 = vsub.f32 %v825_v49, %v857_v1 }
 0x2df   : > { %v1053_v27 = vmul.f32 0.5, %v1052_v61 }
 0x2e0   : > { %v1728_v41 = vpop.eup %1727  ;;  %v1386_v19 = vadd.f32 %v2102_v25, %v1353_v22  ;;  %v921_v32 = vmax.f32 %v889_v36, 0.0 }
 0x2e1   : > { %v1054_v8 = vsub.f32 1.5, %v1053_v27  ;;  %v1201_v46 = vmul.f32 %v1728_v41, %v952_v40  ;;  %v736_v33 = vpop.xlane.xlu2 %735  ;;  %v617_v2 = vpop.xlane.xlu1 %616  ;;  %vm1207_vm13 = vweird.f32 %v1728_v41 }
 0x2e2   : > { %1418 = vst.msk [vmem:[%s2111_s6 + $0x40] sm:$0xff] %vm536_vm2, %v1386_v19  ;;  %v953_v60 = vadd.f32 1e-05, %v921_v32  ;;  %v810_v3 = vmul.f32 %v736_v33, %v2070_v54  ;;  %vm1208_vm15 = vmor %vm1206_vm14, %vm1207_vm13  ;;  %v2631_v49 = vmul.f32 %v2070_v54, %v617_v2 }
 0x2e3   : > { %v1055_v14 = vmul.f32 %v1726_v29, %v1054_v8  ;;  %v1202_v7 = vmul.f32 %v1728_v41, %v1201_v46  ;;  %v1305_v46 = vsub.f32 %v2246_v11, %v2597_v12  ;;  %v1290_v11 = vsub.f32 %v2235_v0, %v2606_v38 }
 0x2e4   : > { %1729 = vrsqrt.f32 %v953_v60  ;;  %v874_v18 = vsub.f32 %v810_v3, %v842_v28  ;;  %v858_v27 = vmul.f32 %v2631_v49, %v2631_v49  ;;  %vm1216_vm1 = vweird.f32 %v953_v60 }
 0x2e5   : > { %v1059_v30 = vsel %vm1058_vm12, %v1726_v29, %v1055_v14  ;;  %v1203_v23 = vmul.f32 0.5, %v1202_v7 }
 0x2e6   : > { %v1321_v5 = vmul.f32 %v1289_v16, %v1059_v30  ;;  %v906_v24 = vmax.f32 %v874_v18, 0.0 }
 0x2e7   : > { %v1204_v58 = vsub.f32 1.5, %v1203_v23 }
 0x2e8   : > { %v1354_v6 = vmul.f32 %v2096_v17, %v1321_v5  ;;  %v938_v4 = vadd.f32 1e-05, %v906_v24 }
 0x2e9   : > { %v1205_v51 = vmul.f32 %v1728_v41, %v1204_v58  ;;  %v572_v53 = vpop.xlane.xlu2 %571  ;;  %v739_v21 = vpop.xlane.xlu1 %738 }
 0x2ea   : > { %v1730_v63 = vpop.eup %1729  ;;  %v1387_v45 = vadd.f32 %v2102_v25, %v1354_v6  ;;  %1731 = vrsqrt.f32 %v938_v4  ;;  %v2621_v13 = vmul.f32 %v2070_v54, %v572_v53  ;;  %v811_v29 = vmul.f32 %v739_v21, %v2070_v54 }
 0x2eb   : > { %v1209_v50 = vsel %vm1208_vm15, %v1728_v41, %v1205_v51  ;;  %v1211_v62 = vmul.f32 %v1730_v63, %v953_v60  ;;  %vm1217_vm0 = vweird.f32 %v1730_v63  ;;  %vm1066_vm5 = vweird.f32 %v938_v4 }
 0x2ec   : > { %1419 = vst.msk [vmem:[%s2111_s6 + $0x48] sm:$0xff] %vm536_vm2, %v1387_v45  ;;  %v1336_v48 = vmul.f32 %v1304_v43, %v1209_v50  ;;  %v843_v40 = vmul.f32 %v2621_v13, %v2621_v13  ;;  %vm1218_vm3 = vmor %vm1216_vm1, %vm1217_vm0 }
 0x2ed   : > { %v1212_v26 = vmul.f32 %v1730_v63, %v1211_v62 }
 0x2ee   : > { %v1369_v34 = vmul.f32 %v2096_v17, %v1336_v48  ;;  %v875_v42 = vsub.f32 %v811_v29, %v843_v40 }
 0x2ef   : > { %v1213_v57 = vmul.f32 0.5, %v1212_v26 }
 0x2f0   : > { %v1732_v20 = vpop.eup %1731  ;;  %v1402_v37 = vadd.f32 %v2102_v25, %v1369_v34  ;;  %v907_v15 = vmax.f32 %v875_v42, 0.0 }
 0x2f1   : > { %v1214_v1 = vsub.f32 1.5, %v1213_v57  ;;  %v1061_v61 = vmul.f32 %v1732_v20, %v938_v4  ;;  %v784_v22 = vpop.xlane.xlu2 %783  ;;  %v575_v36 = vpop.xlane.xlu1 %574  ;;  %vm1067_vm4 = vweird.f32 %v1732_v20 }
 0x2f2   : > { %1434 = vst.msk [vmem:[%s2111_s6 + $0xc0] sm:$0xff] %vm536_vm2, %v1402_v37  ;;  %v939_v41 = vadd.f32 1e-05, %v907_v15  ;;  %v826_v19 = vmul.f32 %v784_v22, %v2070_v54  ;;  %vm1068_vm6 = vmor %vm1066_vm5, %vm1067_vm4  ;;  %v2654_v38 = vmul.f32 %v2070_v54, %v575_v36  ;;  %v1291_v15 = vsub.f32 %v2279_v9, %v2621_v13 }
 0x2f3   : > { %v1215_v32 = vmul.f32 %v1730_v63, %v1214_v1  ;;  %v1062_v8 = vmul.f32 %v1732_v20, %v1061_v61  ;;  %v1306_v9 = vsub.f32 %v2272_v52, %v2631_v49 }
 0x2f4   : > { %1733 = vrsqrt.f32 %v939_v41  ;;  %v890_v33 = vsub.f32 %v826_v19, %v858_v27  ;;  %v844_v34 = vmul.f32 %v2654_v38, %v2654_v38  ;;  %vm1076_vm8 = vweird.f32 %v939_v41 }
 0x2f5   : > { %v1219_v2 = vsel %vm1218_vm3, %v1730_v63, %v1215_v32  ;;  %v1063_v28 = vmul.f32 0.5, %v1062_v8 }
 0x2f6   : > { %v1337_v3 = vmul.f32 %v1305_v46, %v1219_v2  ;;  %v922_v14 = vmax.f32 %v890_v33, 0.0 }
 0x2f7   : > { %v1064_v7 = vsub.f32 1.5, %v1063_v28 }
 0x2f8   : > { %v1370_v16 = vmul.f32 %v2096_v17, %v1337_v3  ;;  %v954_v18 = vadd.f32 1e-05, %v922_v14 }
 0x2f9   : > { %v1065_v30 = vmul.f32 %v1732_v20, %v1064_v7  ;;  %v620_v60 = vpop.xlane.xlu2 %619  ;;  %v787_v23 = vpop.xlane.xlu1 %786 }
 0x2fa   : > { %v1734_v5 = vpop.eup %1733  ;;  %v1403_v12 = vadd.f32 %v2102_v25, %v1370_v16  ;;  %1735 = vrsqrt.f32 %v954_v18  ;;  %v2645_v24 = vmul.f32 %v2070_v54, %v620_v60  ;;  %v827_v51 = vmul.f32 %v787_v23, %v2070_v54 }
 0x2fb   : > { %v1069_v58 = vsel %vm1068_vm6, %v1732_v20, %v1065_v30  ;;  %v1071_v6 = vmul.f32 %v1734_v5, %v939_v41  ;;  %vm1077_vm7 = vweird.f32 %v1734_v5  ;;  %vm1226_vm11 = vweird.f32 %v954_v18 }
 0x2fc   : > { %1435 = vst.msk [vmem:[%s2111_s6 + $0xc8] sm:$0xff] %vm536_vm2, %v1403_v12  ;;  %v1322_v4 = vmul.f32 %v1290_v11, %v1069_v58  ;;  %v859_v53 = vmul.f32 %v2645_v24, %v2645_v24  ;;  %vm1078_vm9 = vmor %vm1076_vm8, %vm1077_vm7 }
 0x2fd   : > { %v1072_v21 = vmul.f32 %v1734_v5, %v1071_v6 }
 0x2fe   : > { %v1355_v0 = vmul.f32 %v2096_v17, %v1322_v4  ;;  %v891_v63 = vsub.f32 %v827_v51, %v859_v53 }
 0x2ff   : > { %v1073_v43 = vmul.f32 0.5, %v1072_v21 }
 0x300   : > { %v1736_v45 = vpop.eup %1735  ;;  %v1388_v50 = vadd.f32 %v2102_v25, %v1355_v0  ;;  %v923_v62 = vmax.f32 %v891_v63, 0.0 }
 0x301   : > { %v1074_v48 = vsub.f32 1.5, %v1073_v43  ;;  %v1221_v40 = vmul.f32 %v1736_v45, %v954_v18  ;;  %v742_v29 = vpop.xlane.xlu2 %741  ;;  %v623_v26 = vpop.xlane.xlu1 %622  ;;  %vm1227_vm10 = vweird.f32 %v1736_v45 }
 0x302   : > { %1420 = vst.msk [vmem:[%s2111_s6 + $0x50] sm:$0xff] %vm536_vm2, %v1388_v50  ;;  %v955_v42 = vadd.f32 1e-05, %v923_v62  ;;  %v812_v57 = vmul.f32 %v742_v29, %v2070_v54  ;;  %vm1228_vm12 = vmor %vm1226_vm11, %vm1227_vm10  ;;  %v2679_v11 = vmul.f32 %v2070_v54, %v623_v26 }
 0x303   : > { %v1075_v20 = vmul.f32 %v1734_v5, %v1074_v48  ;;  %v1222_v37 = vmul.f32 %v1736_v45, %v1221_v40 }
 0x304   : > { %1737 = vrsqrt.f32 %v955_v42  ;;  %v876_v1 = vsub.f32 %v812_v57, %v844_v34  ;;  %v860_v53 = vmul.f32 %v2679_v11, %v2679_v11  ;;  %vm1236_vm14 = vweird.f32 %v955_v42 }
 0x305   : > { %v1079_v61 = vsel %vm1078_vm9, %v1734_v5, %v1075_v20  ;;  %v1223_v22 = vmul.f32 0.5, %v1222_v37 }
 0x306   : > { %v1323_v36 = vmul.f32 %v1291_v15, %v1079_v61  ;;  %v908_v27 = vmax.f32 %v876_v1, 0.0 }
 0x307   : > { %v1224_v19 = vsub.f32 1.5, %v1223_v22 }
 0x308   : > { %v1356_v32 = vmul.f32 %v2096_v17, %v1323_v36  ;;  %v940_v8 = vadd.f32 1e-05, %v908_v27 }
 0x309   : > { %v1225_v46 = vmul.f32 %v1736_v45, %v1224_v19  ;;  %v578_v41 = vpop.xlane.xlu2 %577  ;;  %v745_v33 = vpop.xlane.xlu1 %744 }
 0x30a   : > { %v1738_v2 = vpop.eup %1737  ;;  %v1389_v13 = vadd.f32 %v2102_v25, %v1356_v32  ;;  %1739 = vrsqrt.f32 %v940_v8  ;;  %v2669_v28 = vmul.f32 %v2070_v54, %v578_v41  ;;  %v813_v18 = vmul.f32 %v745_v33, %v2070_v54 }
 0x30b   : > { %v1229_v3 = vsel %vm1228_vm12, %v1736_v45, %v1225_v46  ;;  %v1231_v14 = vmul.f32 %v1738_v2, %v955_v42  ;;  %vm1237_vm13 = vweird.f32 %v1738_v2  ;;  %v1307_v45 = vsub.f32 %v2343_v56, %v2645_v24 }
 0x30c   : > { %1421 = vst.msk [vmem:[%s2111_s6 + $0x58] sm:$0xff] %vm536_vm2, %v1389_v13  ;;  %v1338_v7 = vmul.f32 %v1306_v9, %v1229_v3  ;;  %v845_v16 = vmul.f32 %v2669_v28, %v2669_v28  ;;  %vm1238_vm15 = vmor %vm1236_vm14, %vm1237_vm13  ;;  %vm1086_vm1 = vweird.f32 %v940_v8  ;;  %v1292_v56 = vsub.f32 %v2323_v39, %v2654_v38 }
 0x30d   : > { %v1232_v30 = vmul.f32 %v1738_v2, %v1231_v14 }
 0x30e   : > { %v1371_v52 = vmul.f32 %v2096_v17, %v1338_v7  ;;  %v877_v49 = vsub.f32 %v813_v18, %v845_v16 }
 0x30f   : > { %v1233_v60 = vmul.f32 0.5, %v1232_v30 }
 0x310   : > { %v1740_v23 = vpop.eup %1739  ;;  %v1404_v5 = vadd.f32 %v2102_v25, %v1371_v52  ;;  %v909_v12 = vmax.f32 %v877_v49, 0.0  ;;  %v1293_v49 = vsub.f32 %v2398_v44, %v2669_v28  ;;  %v1308_v44 = vsub.f32 %v2376_v55, %v2679_v11 }
 0x311   : > { %v1234_v58 = vsub.f32 1.5, %v1233_v60  ;;  %v1081_v6 = vmul.f32 %v1740_v23, %v940_v8  ;;  %v790_v51 = vpop.xlane.xlu2 %789  ;;  %v581_v4 = vpop.xlane.xlu1 %580  ;;  %vm1087_vm0 = vweird.f32 %v1740_v23 }
 0x312   : > { %1436 = vst.msk [vmem:[%s2111_s6 + $0xd0] sm:$0xff] %vm536_vm2, %v1404_v5  ;;  %v941_v21 = vadd.f32 1e-05, %v909_v12  ;;  %v828_v0 = vmul.f32 %v790_v51, %v2070_v54  ;;  %vm1088_vm3 = vmor %vm1086_vm1, %vm1087_vm0  ;;  %v2702_v38 = vmul.f32 %v2070_v54, %v581_v4 }
 0x313   : > { %v1235_v63 = vmul.f32 %v1738_v2, %v1234_v58  ;;  %v1082_v43 = vmul.f32 %v1740_v23, %v1081_v6 }
 0x314   : > { %1741 = vrsqrt.f32 %v941_v21  ;;  %v892_v50 = vsub.f32 %v828_v0, %v860_v53  ;;  %v846_v7 = vmul.f32 %v2702_v38, %v2702_v38  ;;  %vm1096_vm5 = vweird.f32 %v941_v21 }
 0x315   : > { %v1239_v62 = vsel %vm1238_vm15, %v1738_v2, %v1235_v63  ;;  %v1083_v48 = vmul.f32 0.5, %v1082_v43 }
 0x316   : > { %v1339_v40 = vmul.f32 %v1307_v45, %v1239_v62  ;;  %v924_v29 = vmax.f32 %v892_v50, 0.0 }
 0x317   : > { %v1084_v26 = vsub.f32 1.5, %v1083_v48 }
 0x318   : > { %v1372_v34 = vmul.f32 %v2096_v17, %v1339_v40  ;;  %v956_v57 = vadd.f32 1e-05, %v924_v29 }
 0x319   : > { %v1085_v20 = vmul.f32 %v1740_v23, %v1084_v26  ;;  %v626_v42 = vpop.xlane.xlu2 %625  ;;  %v793_v37 = vpop.xlane.xlu1 %792 }
 0x31a   : > { %v1742_v15 = vpop.eup %1741  ;;  %v1405_v24 = vadd.f32 %v2102_v25, %v1372_v34  ;;  %1743 = vrsqrt.f32 %v956_v57  ;;  %v2693_v1 = vmul.f32 %v2070_v54, %v626_v42  ;;  %v829_v36 = vmul.f32 %v793_v37, %v2070_v54 }
 0x31b   : > { %v1089_v61 = vsel %vm1088_vm3, %v1740_v23, %v1085_v20  ;;  %v1091_v22 = vmul.f32 %v1742_v15, %v941_v21  ;;  %vm1097_vm4 = vweird.f32 %v1742_v15  ;;  %vm1246_vm8 = vweird.f32 %v956_v57 }
 0x31c   : > { %1437 = vst.msk [vmem:[%s2111_s6 + $0xd8] sm:$0xff] %vm536_vm2, %v1405_v24  ;;  %v1324_v27 = vmul.f32 %v1292_v56, %v1089_v61  ;;  %v861_v19 = vmul.f32 %v2693_v1, %v2693_v1  ;;  %vm1098_vm6 = vmor %vm1096_vm5, %vm1097_vm4 }
 0x31d   : > { %v1092_v32 = vmul.f32 %v1742_v15, %v1091_v22 }
 0x31e   : > { %v1357_v39 = vmul.f32 %v2096_v17, %v1324_v27  ;;  %v893_v8 = vsub.f32 %v829_v36, %v861_v19  ;;  %v1309_v19 = vsub.f32 %v2444_v31, %v2693_v1  ;;  %v1294_v31 = vsub.f32 %v2429_v59, %v2702_v38 }
 0x31f   : > { %v1093_v46 = vmul.f32 0.5, %v1092_v32 }
 0x320   : > { %v1744_v41 = vpop.eup %1743  ;;  %v1390_v33 = vadd.f32 %v2102_v25, %v1357_v39  ;;  %v925_v2 = vmax.f32 %v893_v8, 0.0 }
 0x321   : > { %v1094_v9 = vsub.f32 1.5, %v1093_v46  ;;  %v1241_v13 = vmul.f32 %v1744_v41, %v956_v57  ;;  %v748_v3 = vpop.xlane.xlu2 %747  ;;  %v2705_v14 = vpop.xlane.xlu1 %628  ;;  %vm1247_vm7 = vweird.f32 %v1744_v41 }
 0x322   : > { %1422 = vst.msk [vmem:[%s2111_s6 + $0x60] sm:$0xff] %vm536_vm2, %v1390_v33  ;;  %v957_v16 = vadd.f32 1e-05, %v925_v2  ;;  %v814_v18 = vmul.f32 %v748_v3, %v2070_v54  ;;  %vm1248_vm9 = vmor %vm1246_vm8, %vm1247_vm7 }
 0x323   : > { %v1095_v30 = vmul.f32 %v1742_v15, %v1094_v9  ;;  %v1242_v52 = vmul.f32 %v1744_v41, %v1241_v13  ;;  %v2741_v9 = vmul.f32 %v2070_v54, %v2705_v14 }
 0x324   : > { %1745 = vrsqrt.f32 %v957_v16  ;;  %v878_v60 = vsub.f32 %v814_v18, %v846_v7  ;;  %vm1256_vm11 = vweird.f32 %v957_v16 }
 0x325   : > { %v1099_v23 = vsel %vm1098_vm6, %v1742_v15, %v1095_v30  ;;  %v1243_v5 = vmul.f32 0.5, %v1242_v52  ;;  %v862_v18 = vmul.f32 %v2741_v9, %v2741_v9 }
 0x326   : > { %v1325_v12 = vmul.f32 %v1293_v49, %v1099_v23  ;;  %v910_v58 = vmax.f32 %v878_v60, 0.0 }
 0x327   : > { %v1244_v6 = vsub.f32 1.5, %v1243_v5 }
 0x328   : > { %v1358_v51 = vmul.f32 %v2096_v17, %v1325_v12  ;;  %v942_v4 = vadd.f32 1e-05, %v910_v58 }
 0x329   : > { %v1245_v53 = vmul.f32 %v1744_v41, %v1244_v6  ;;  %v584_v21 = vpop.xlane.xlu2 %583  ;;  %v751_v0 = vpop.xlane.xlu1 %750 }
 0x32a   : > { %v1746_v63 = vpop.eup %1745  ;;  %v1391_v28 = vadd.f32 %v2102_v25, %v1358_v51  ;;  %1747 = vrsqrt.f32 %v942_v4  ;;  %v2719_v43 = vmul.f32 %v2070_v54, %v584_v21  ;;  %v815_v40 = vmul.f32 %v751_v0, %v2070_v54 }
 0x32b   : > { %v1249_v45 = vsel %vm1248_vm9, %v1744_v41, %v1245_v53  ;;  %v1251_v50 = vmul.f32 %v1746_v63, %v957_v16  ;;  %vm1257_vm10 = vweird.f32 %v1746_v63  ;;  %vm1106_vm14 = vweird.f32 %v942_v4 }
 0x32c   : > { %1423 = vst.msk [vmem:[%s2111_s6 + $0x68] sm:$0xff] %vm536_vm2, %v1391_v28  ;;  %v1340_v62 = vmul.f32 %v1308_v44, %v1249_v45  ;;  %v847_v48 = vmul.f32 %v2719_v43, %v2719_v43  ;;  %vm1258_vm12 = vmor %vm1256_vm11, %vm1257_vm10  ;;  %v1295_v21 = vsub.f32 %v2500_v47, %v2719_v43 }
 0x32d   : > { %v1252_v29 = vmul.f32 %v1746_v63, %v1251_v50 }
 0x32e   : > { %v1373_v55 = vmul.f32 %v2096_v17, %v1340_v62  ;;  %v879_v11 = vsub.f32 %v815_v40, %v847_v48 }
 0x32f   : > { %v1253_v26 = vmul.f32 0.5, %v1252_v29 }
 0x330   : > { %v1748_v34 = vpop.eup %1747  ;;  %v1406_v57 = vadd.f32 %v2102_v25, %v1373_v55  ;;  %v911_v20 = vmax.f32 %v879_v11, 0.0 }
 0x331   : > { %v1254_v42 = vsub.f32 1.5, %v1253_v26  ;;  %v1101_v37 = vmul.f32 %v1748_v34, %v942_v4  ;;  %v632_v15 = vpop.xlane.xlu2 %631  ;;  %v799_v56 = vpop.xlane.xlu1 %798  ;;  %vm1107_vm13 = vweird.f32 %v1748_v34 }
 0x332   : > { %1438 = vst.msk [vmem:[%s2111_s6 + $0xe0] sm:$0xff] %vm536_vm2, %v1406_v57  ;;  %v943_v24 = vadd.f32 1e-05, %v911_v20  ;;  %v2731_v61 = vmul.f32 %v2070_v54, %v632_v15  ;;  %v831_v22 = vmul.f32 %v799_v56, %v2070_v54  ;;  %vm1108_vm15 = vmor %vm1106_vm14, %vm1107_vm13 }
 0x333   : > { %v1255_v36 = vmul.f32 %v1746_v63, %v1254_v42  ;;  %v1102_v27 = vmul.f32 %v1748_v34, %v1101_v37  ;;  %v1310_v42 = vsub.f32 %v2476_v35, %v2741_v9 }
 0x334   : > { %1749 = vrsqrt.f32 %v943_v24  ;;  %v863_v32 = vmul.f32 %v2731_v61, %v2731_v61  ;;  %vm1116_vm1 = vweird.f32 %v943_v24  ;;  %v1311_v47 = vsub.f32 %v2520_v10, %v2731_v61 }
 0x335   : > { %v1259_v39 = vsel %vm1258_vm12, %v1746_v63, %v1255_v36  ;;  %v1103_v8 = vmul.f32 0.5, %v1102_v27 }
 0x336   : > { %v1341_v46 = vmul.f32 %v1309_v19, %v1259_v39  ;;  %v895_v41 = vsub.f32 %v831_v22, %v863_v32 }
 0x337   : > { %v1104_v33 = vsub.f32 1.5, %v1103_v8 }
 0x338   : > { %v1374_v2 = vmul.f32 %v2096_v17, %v1341_v46  ;;  %v927_v13 = vmax.f32 %v895_v41, 0.0 }
 0x339   : > { %v1105_v1 = vmul.f32 %v1748_v34, %v1104_v33  ;;  %v796_v3 = vpop.xlane.xlu2 %795 }
 0x33a   : > { %v1750_v7 = vpop.eup %1749  ;;  %v1407_v16 = vadd.f32 %v2102_v25, %v1374_v2  ;;  %v959_v30 = vadd.f32 1e-05, %v927_v13  ;;  %v830_v52 = vmul.f32 %v796_v3, %v2070_v54 }
 0x33b   : > { %v1109_v14 = vsel %vm1108_vm15, %v1748_v34, %v1105_v1  ;;  %v1111_v49 = vmul.f32 %v1750_v7, %v943_v24  ;;  %vm1117_vm0 = vweird.f32 %v1750_v7 }
 0x33c   : > { %1439 = vst.msk [vmem:[%s2111_s6 + $0xe8] sm:$0xff] %vm536_vm2, %v1407_v16  ;;  %v1326_v60 = vmul.f32 %v1294_v31, %v1109_v14  ;;  %1751 = vrsqrt.f32 %v959_v30  ;;  %v894_v59 = vsub.f32 %v830_v52, %v862_v18  ;;  %vm1118_vm3 = vmor %vm1116_vm1, %vm1117_vm0  ;;  %vm1276_vm5 = vweird.f32 %v959_v30 }
 0x33d   : > { %v1112_v38 = vmul.f32 %v1750_v7, %v1111_v49 }
 0x33e   : > { %v1359_v23 = vmul.f32 %v2096_v17, %v1326_v60  ;;  %v926_v5 = vmax.f32 %v894_v59, 0.0 }
 0x33f   : > { %v1113_v12 = vmul.f32 0.5, %v1112_v38 }
 0x340   : > { %v1392_v58 = vadd.f32 %v2102_v25, %v1359_v23  ;;  %v958_v6 = vadd.f32 1e-05, %v926_v5 }
 0x341   : > { %v1114_v51 = vsub.f32 1.5, %v1113_v12 }
 0x342   : > { %v1752_v4 = vpop.eup %1751  ;;  %1424 = vst.msk [vmem:[%s2111_s6 + $0x70] sm:$0xff] %vm536_vm2, %v1392_v58  ;;  %1753 = vrsqrt.f32 %v958_v6  ;;  %vm1266_vm8 = vweird.f32 %v958_v6 }
 0x343   : > { %v1115_v54 = vmul.f32 %v1750_v7, %v1114_v51  ;;  %v1271_v53 = vmul.f32 %v1752_v4, %v959_v30  ;;  %vm1277_vm4 = vweird.f32 %v1752_v4 }
 0x344   : > { %vm1278_vm6 = vmor %vm1276_vm5, %vm1277_vm4 }
 0x345   : > { %v1119_v0 = vsel %vm1118_vm3, %v1750_v7, %v1115_v54  ;;  %v1272_v63 = vmul.f32 %v1752_v4, %v1271_v53 }
 0x346   : > { %v1327_v44 = vmul.f32 %v1295_v21, %v1119_v0 }
 0x347   : > { %v1273_v28 = vmul.f32 0.5, %v1272_v63 }
 0x348   : > { %v1754_v45 = vpop.eup %1753  ;;  %v1360_v50 = vmul.f32 %v2096_v17, %v1327_v44 }
 0x349   : > { %v1274_v62 = vsub.f32 1.5, %v1273_v28  ;;  %v1261_v48 = vmul.f32 %v1754_v45, %v958_v6  ;;  %vm1267_vm7 = vweird.f32 %v1754_v45 }
 0x34a   : > { %v1393_v40 = vadd.f32 %v2102_v25, %v1360_v50  ;;  %vm1268_vm9 = vmor %vm1266_vm8, %vm1267_vm7 }
 0x34b   : > { %v1275_v29 = vmul.f32 %v1752_v4, %v1274_v62  ;;  %v1262_v55 = vmul.f32 %v1754_v45, %v1261_v48 }
 0x34c   : > { %1425 = vst.msk [vmem:[%s2111_s6 + $0x78] sm:$0xff] %vm536_vm2, %v1393_v40 }
 0x34d   : > { %v1279_v43 = vsel %vm1278_vm6, %v1752_v4, %v1275_v29  ;;  %v1263_v11 = vmul.f32 0.5, %v1262_v55 }
 0x34e   : > { %v1343_v26 = vmul.f32 %v1311_v47, %v1279_v43 }
 0x34f   : > { %v1264_v34 = vsub.f32 1.5, %v1263_v11 }
 0x350   : > { %v1376_v57 = vmul.f32 %v2096_v17, %v1343_v26 }
 0x351   : > { %v1265_v20 = vmul.f32 %v1754_v45, %v1264_v34 }
 0x352   : > { %v1409_v37 = vadd.f32 %v2102_v25, %v1376_v57 }
 0x353   : > { %v1269_v15 = vsel %vm1268_vm9, %v1754_v45, %v1265_v20 }
 0x354   : > { %1441 = vst.msk [vmem:[%s2111_s6 + $0xf8] sm:$0xff] %vm536_vm2, %v1409_v37  ;;  %v1342_v10 = vmul.f32 %v1310_v42, %v1269_v15 }
 0x356   : > { %v1375_v56 = vmul.f32 %v2096_v17, %v1342_v10 }
 0x358   : > { %v1408_v24 = vadd.f32 %v2102_v25, %v1375_v56 }
 0x35a   : > { %1440 = vst.msk [vmem:[%s2111_s6 + $0xf0] sm:$0xff] %vm536_vm2, %v1408_v24 }
 0x35b PF: > { %s17_s17 = sadd.s32 1, %s1899_s17   ;;  %s2799_s15 = smov %s1997_s12 }
 0x35c   : > { %p14_p2 = scmp.ge.s32.totalorder %s17_s17, 4   ;;  %s2800_s12 = smov %s1883_s13 }
 0x35d   : > { %s2801_s13 = smov %s1887_s14  ;;  %s2802_s14 = smov %s2799_s15 }
 0x35e   : > { %s2803_s15 = smov %s1895_s16  ;;  %s2804_s16 = smov %s2806_s5 }
 0x35f   :  { %16 = sbr.rel (!%p14_p2) target bundleno = 5 (0x5), region = 80 }
 0x364   :  { %1472 = vsyncpa [#allocation3], 1 }
 0x365   :  { %1474 = vsyncpa [#allocation3 + $0x1], 1 }
 0x366   :  { %1475 = vsyncpa [#allocation5], 1 }

</bundles_post_ra>
